<compile_context>
chip_gen: v7x
topology: tpu7x:2x2x1
jax: 0.10.0
libtpu: 0.0.40
codegen_flags: <defaults>
</compile_context>

<pallas_src>
import functools

import jax
import jax.numpy as jnp
from jax import lax
from jax.experimental import pallas as pl
from jax.experimental.pallas import tpu as pltpu

EPS = 1e-5
LANE = 128
VMEM_LIMIT = 48 * 1024 * 1024   # explicit scoped-VMEM limit (fits v5e/v6e/v7x)
BN_TM = 512                     # fixed row tile for the BN/ReLU pass (review R10)


def _round_up(x, m):
    return (x + m - 1) // m * m


def _pick_row_block(Ho, Wo):
    """Largest divisor TH of Ho with TH*Wo <= 256 (MXU-height-sized matmul M)."""
    cap = max(1, 256 // max(Wo, 1))
    th = 1
    for t in range(1, min(Ho, cap) + 1):
        if Ho % t == 0:
            th = t
    return th


# ---------------------------------------------------------------------------
# Kernel 1: fused conv (single im2col dot per row block) + partial BN statistics
# Grid = (N, cout_tiles, row_blocks); the padded image is resident in VMEM for the
# whole image (input block index depends only on n).
# ---------------------------------------------------------------------------
def _make_conv_stats_kernel(KH, KW, TH, Wo, stride):
    th_in = (TH - 1) * stride + KH          # haloed input rows per row block
    hspan = (TH - 1) * stride + 1
    wspan = (Wo - 1) * stride + 1

    def kernel(x_ref, w_ref, y_ref, st_ref):
        hb = pl.program_id(2)
        row0 = pl.multiple_of(hb * (TH * stride), TH * stride)

        # R3: single dynamic slice of the VMEM-resident padded image = the haloed
        # row window for this block of TH output rows.
        xwin = x_ref[0, pl.ds(row0, th_in)]                  # (th_in, Wp, Cinp) bf16

        # R2: im2col in VMEM.  Channels are padded to a multiple of 128 lanes in
        # the wrapper, so every concat offset below is lane-aligned.
        cols = []
        for kh in range(KH):
            xk = xwin[kh:kh + hspan:stride]                  # (TH, Wp, Cinp)
            for kw in range(KW):
                cols.append(xk[:, kw:kw + wspan:stride, :])  # (TH, Wo, Cinp)
        patch = jnp.concatenate(cols, axis=-1)               # (TH, Wo, KH*KW*Cinp)
        patch = patch.reshape(TH * Wo, patch.shape[-1])      # M = TH*Wo

        # One MXU dot per row block, f32 accumulation.
        acc = jnp.dot(patch, w_ref[...],
                      preferred_element_type=jnp.float32)    # (TH*Wo, TC)

        # R4: bf16 intermediate; stats below are taken from the f32 accumulator.
        y_ref[0] = acc.reshape(TH, Wo, acc.shape[-1]).astype(y_ref.dtype)

        # R5: per-channel (sum, sumsq) accumulated in the revisited output block
        # across the hb ("arbitrary") axis; HBM write happens once per (n, ct).
        @pl.when(hb == 0)
        def _init():
            st_ref[...] = jnp.zeros_like(st_ref)

        s1 = jnp.sum(acc, axis=0, keepdims=True)             # (1, TC)
        s2 = jnp.sum(acc * acc, axis=0, keepdims=True)       # (1, TC)
        st_ref[0] = st_ref[0] + jnp.concatenate([s1, s2], axis=0)

    return kernel


def conv_and_stats(xp_bf16, w_bf16, *, KH, KW, Ho, Wo, stride, TH, TC):
    N, Hp, Wp, Cinp = xp_bf16.shape
    KKC, Coutp = w_bf16.shape
    n_hb = Ho // TH
    n_ct = Coutp // TC
    kernel = _make_conv_stats_kernel(KH, KW, TH, Wo, stride)

    # NOTE(v7x): for inception-size weight slabs, add pipeline_mode=pl.Buffered(1)
    # to the weight spec to avoid double-buffering a block whose index rarely
    # changes; at these sizes it is not needed.
    y, stats = pl.pallas_call(
        kernel,
        out_shape=(
            jax.ShapeDtypeStruct((N, Ho, Wo, Coutp), jnp.bfloat16),   # R4: bf16
            jax.ShapeDtypeStruct((N, 2, Coutp), jnp.float32),
        ),
        grid_spec=pltpu.PrefetchScalarGridSpec(
            num_scalar_prefetch=0,
            grid=(N, n_ct, n_hb),
            in_specs=[
                # Whole padded image; block index depends only on n -> one DMA per
                # image (Pallas skips re-fetch when the block index is unchanged).
                pl.BlockSpec((1, Hp, Wp, Cinp), lambda n, ct, hb: (n, 0, 0, 0)),
                # (KH*KW*Cinp, TC) weight slab per Cout tile, resident across hb.
                pl.BlockSpec((KKC, TC), lambda n, ct, hb: (0, ct)),
            ],
            out_specs=[
                pl.BlockSpec((1, TH, Wo, TC), lambda n, ct, hb: (n, hb, 0, ct)),
                # Revisited across hb -> accumulator; written once per (n, ct).
                pl.BlockSpec((1, 2, TC), lambda n, ct, hb: (n, 0, ct)),
            ],
        ),
        compiler_params=pltpu.CompilerParams(
            dimension_semantics=("parallel", "parallel", "arbitrary"),
            vmem_limit_bytes=VMEM_LIMIT,
        ),
    )(xp_bf16, w_bf16)
    return y, stats


# ---------------------------------------------------------------------------
# Kernel 2: BN apply (per-channel scale/shift precomputed in f32) + ReLU,
# tiled over M = N*Ho*Wo with a fixed 512-row tile and a cdiv grid (R10).
# ---------------------------------------------------------------------------
def _bn_relu_kernel(x_ref, s_ref, b_ref, o_ref):
    x = x_ref[...].astype(jnp.float32)
    o_ref[...] = jnp.maximum(x * s_ref[...] + b_ref[...], 0.0)


def bn_relu_apply(y2d, scale, shift):
    M, Coutp = y2d.shape
    # Never fall back to tm = M; a partial tail block is handled by Pallas's
    # automatic bounds masking (elementwise op, so garbage tail rows are harmless).
    tm = BN_TM if M >= BN_TM else _round_up(M, 8)
    return pl.pallas_call(
        _bn_relu_kernel,
        out_shape=jax.ShapeDtypeStruct((M, Coutp), jnp.float32),
        grid_spec=pltpu.PrefetchScalarGridSpec(
            num_scalar_prefetch=0,
            grid=(pl.cdiv(M, tm),),
            in_specs=[
                pl.BlockSpec((tm, Coutp), lambda i: (i, 0)),
                pl.BlockSpec((1, Coutp), lambda i: (0, 0)),
                pl.BlockSpec((1, Coutp), lambda i: (0, 0)),
            ],
            out_specs=pl.BlockSpec((tm, Coutp), lambda i: (i, 0)),
        ),
        compiler_params=pltpu.CompilerParams(
            dimension_semantics=("parallel",),
            vmem_limit_bytes=VMEM_LIMIT,
        ),
    )(y2d, scale, shift)


# ---------------------------------------------------------------------------
# Wrapper: conv_block forward (NCHW in / NCHW out, like the PyTorch module)
# ---------------------------------------------------------------------------
@functools.partial(jax.jit, static_argnames=("stride", "padding"))
def conv_block_forward(x_nchw, conv_w, conv_b, bn_gamma, bn_beta,
                       *, stride=1, padding=1):
    # Conv bias is exactly cancelled by training-mode BN mean subtraction.
    del conv_b

    N, Cin, H, W = x_nchw.shape
    Cout, _, KH, KW = conv_w.shape
    Ho = (H + 2 * padding - KH) // stride + 1
    Wo = (W + 2 * padding - KW) // stride + 1
    Coutp = _round_up(Cout, LANE)
    # Lane-align channels so the in-kernel im2col concat is aligned; the VMEM lane
    # layout pads channels to 128 regardless, so this costs no extra VMEM.
    Cinp = _round_up(Cin, LANE)

    # NCHW -> NHWC, cast to bf16 BEFORE padding (halves glue HBM traffic).
    x = jnp.transpose(x_nchw, (0, 2, 3, 1)).astype(jnp.bfloat16)
    xp = jnp.pad(x, ((0, 0), (padding, padding), (padding, padding),
                     (0, Cinp - Cin)))
    # TODO(synk): NCHW<->NHWC transposes, spatial zero-pad and final de-pad remain
    # XLA glue; keep NHWC end-to-end / fold the de-pad into bn_relu's out_specs if
    # the downstream consumer allows it.

    # Weights: (Cout, Cin, KH, KW) -> (KH*KW*Cinp, Coutp), matching the patch's
    # (kh, kw, c) row-major K ordering; lanes zero-padded; bf16 for the MXU.
    w = jnp.transpose(conv_w, (2, 3, 1, 0))                          # (KH, KW, Cin, Cout)
    w = jnp.pad(w, ((0, 0), (0, 0), (0, Cinp - Cin), (0, Coutp - Cout)))
    w = w.reshape(KH * KW * Cinp, Coutp).astype(jnp.bfloat16)

    TH = _pick_row_block(Ho, Wo)                                     # R1
    TC = 256 if Coutp % 256 == 0 else 128                            # R6

    y, stats = conv_and_stats(xp, w, KH=KH, KW=KW, Ho=Ho, Wo=Wo,
                              stride=stride, TH=TH, TC=TC)

    # Tiny per-channel reduction of the per-image partial stats (f32).
    cnt = jnp.float32(N * Ho * Wo)
    s = jnp.sum(stats, axis=0)                                       # (2, Coutp)
    mean = s[0] / cnt
    var = jnp.maximum(s[1] / cnt - mean * mean, 0.0)                 # biased (PyTorch BN)
    inv = lax.rsqrt(var + EPS)
    gamma_p = jnp.pad(bn_gamma.astype(jnp.float32), (0, Coutp - Cout))
    beta_p = jnp.pad(bn_beta.astype(jnp.float32), (0, Coutp - Cout))
    scale = (gamma_p * inv).reshape(1, Coutp)
    shift = (beta_p - mean * gamma_p * inv).reshape(1, Coutp)

    M = N * Ho * Wo
    out2d = bn_relu_apply(y.reshape(M, Coutp), scale, shift)

    out = out2d[:, :Cout].reshape(N, Ho, Wo, Cout)
    return jnp.transpose(out, (0, 3, 1, 2))                          # back to NCHW


# ---------------------------------------------------------------------------
# Pure-JAX reference with PyTorch conv_block semantics (training-mode BN, bias
# included and cancelled by BN).  Conv inputs are rounded through bf16 to mirror
# the MXU input dtype; everything else is f32.  The kernel additionally stores
# the conv intermediate in bf16, so tolerances are ~1 bf16 ulp / sigma.
# ---------------------------------------------------------------------------
def reference_forward(x, w, b, gamma, beta, *, stride=1, padding=1):
    xb = x.astype(jnp.bfloat16).astype(jnp.float32)
    wb = w.astype(jnp.bfloat16).astype(jnp.float32)
    y = lax.conv_general_dilated(
        xb, wb, window_strides=(stride, stride),
        padding=((padding, padding), (padding, padding)),
        dimension_numbers=("NCHW", "OIHW", "NCHW"))
    y = y + b.reshape(1, -1, 1, 1)
    mean = y.mean(axis=(0, 2, 3), keepdims=True)
    var = ((y - mean) ** 2).mean(axis=(0, 2, 3), keepdims=True)
    y = (y - mean) * lax.rsqrt(var + EPS)
    y = y * gamma.reshape(1, -1, 1, 1) + beta.reshape(1, -1, 1, 1)
    return jnp.maximum(y, 0.0)


if __name__ == "__main__":
    # conv_block(in_channels=4, out_channels=8, kernel_size=3, stride=1, padding=1)
    N, Cin, H, W = 2, 4, 16, 16
    Cout, KH, KW = 8, 3, 3

    key = jax.random.PRNGKey(0)
    kx, kw_, kb = jax.random.split(key, 3)
    x = jax.random.normal(kx, (N, Cin, H, W), dtype=jnp.float32)
    conv_w = 0.1 * jax.random.normal(kw_, (Cout, Cin, KH, KW), dtype=jnp.float32)
    conv_b = 0.1 * jax.random.normal(kb, (Cout,), dtype=jnp.float32)
    bn_gamma = jnp.ones((Cout,), dtype=jnp.float32)   # PyTorch BN default init
    bn_beta = jnp.zeros((Cout,), dtype=jnp.float32)

    out = conv_block_forward(x, conv_w, conv_b, bn_gamma, bn_beta,
                             stride=1, padding=1)
    out = jax.block_until_ready(out)
    assert out.shape == (N, Cout, H, W)

    ref = reference_forward(x, conv_w, conv_b, bn_gamma, bn_beta,
                            stride=1, padding=1)
    err = jnp.abs(out - ref)
    max_err = float(err.max())
    mean_err = float(err.mean())
    # Tolerances account for the bf16 conv intermediate (review R4) on normalized
    # (unit-variance) outputs: worst case ~1 bf16 ulp / sigma ~= 1.5e-2.
    assert max_err < 5e-2, f"max abs err {max_err}"
    assert mean_err < 1e-2, f"mean abs err {mean_err}"

    print("KERNEL_OK")
</pallas_src>

<mosaic_0001>
module attributes {stable_mosaic.version = 11 : i64} {
  func.func @kernel(%arg0: i32, %arg1: i32, %arg2: i32, %arg3: memref<1x18x18x128xbf16, #tpu.memory_space<vmem>>, %arg4: memref<1152x128xbf16, #tpu.memory_space<vmem>>, %arg5: memref<1x16x16x128xbf16, #tpu.memory_space<vmem>>, %arg6: memref<1x2x128xf32, #tpu.memory_space<vmem>>) attributes {dimension_semantics = [#tpu.dimension_semantics<parallel>, #tpu.dimension_semantics<parallel>, #tpu.dimension_semantics<arbitrary>], iteration_bounds = array<i64: 2, 1, 1>, scalar_prefetch = 0 : i64, scratch_operands = 0 : i64, tpu.core_type = #tpu.core_type<tc>, window_params = [{transform_indices = @transform_0, window_bounds = array<i64: 1, 18, 18, 128>}, {transform_indices = @transform_1, window_bounds = array<i64: 1152, 128>}, {transform_indices = @transform_2, window_bounds = array<i64: 1, 16, 16, 128>}, {transform_indices = @transform_3, window_bounds = array<i64: 1, 2, 128>}]} {
    %c16_i32 = arith.constant 16 : i32
    %0 = arith.muli %arg2, %c16_i32 : i32
    %1 = tpu.assume_multiple %0, 16 : i32
    %c0 = arith.constant 0 : index
    %2 = arith.index_cast %1 : i32 to index
    %c0_0 = arith.constant 0 : index
    %c0_1 = arith.constant 0 : index
    %3 = vector.load %arg3[%c0, %2, %c0_0, %c0_1] : memref<1x18x18x128xbf16, #tpu.memory_space<vmem>>, vector<1x18x18x128xbf16>
    %4 = vector.shape_cast %3 : vector<1x18x18x128xbf16> to vector<18x18x128xbf16>
    %5 = vector.extract_strided_slice %4 {offsets = [0, 0, 0], sizes = [16, 18, 128], strides = [1, 1, 1]} : vector<18x18x128xbf16> to vector<16x18x128xbf16>
    %6 = vector.extract_strided_slice %5 {offsets = [0, 0, 0], sizes = [16, 16, 128], strides = [1, 1, 1]} : vector<16x18x128xbf16> to vector<16x16x128xbf16>
    %7 = vector.extract_strided_slice %5 {offsets = [0, 1, 0], sizes = [16, 16, 128], strides = [1, 1, 1]} : vector<16x18x128xbf16> to vector<16x16x128xbf16>
    %8 = vector.extract_strided_slice %5 {offsets = [0, 2, 0], sizes = [16, 16, 128], strides = [1, 1, 1]} : vector<16x18x128xbf16> to vector<16x16x128xbf16>
    %9 = vector.extract_strided_slice %4 {offsets = [1, 0, 0], sizes = [16, 18, 128], strides = [1, 1, 1]} : vector<18x18x128xbf16> to vector<16x18x128xbf16>
    %10 = vector.extract_strided_slice %9 {offsets = [0, 0, 0], sizes = [16, 16, 128], strides = [1, 1, 1]} : vector<16x18x128xbf16> to vector<16x16x128xbf16>
    %11 = vector.extract_strided_slice %9 {offsets = [0, 1, 0], sizes = [16, 16, 128], strides = [1, 1, 1]} : vector<16x18x128xbf16> to vector<16x16x128xbf16>
    %12 = vector.extract_strided_slice %9 {offsets = [0, 2, 0], sizes = [16, 16, 128], strides = [1, 1, 1]} : vector<16x18x128xbf16> to vector<16x16x128xbf16>
    %13 = vector.extract_strided_slice %4 {offsets = [2, 0, 0], sizes = [16, 18, 128], strides = [1, 1, 1]} : vector<18x18x128xbf16> to vector<16x18x128xbf16>
    %14 = vector.extract_strided_slice %13 {offsets = [0, 0, 0], sizes = [16, 16, 128], strides = [1, 1, 1]} : vector<16x18x128xbf16> to vector<16x16x128xbf16>
    %15 = vector.extract_strided_slice %13 {offsets = [0, 1, 0], sizes = [16, 16, 128], strides = [1, 1, 1]} : vector<16x18x128xbf16> to vector<16x16x128xbf16>
    %16 = vector.extract_strided_slice %13 {offsets = [0, 2, 0], sizes = [16, 16, 128], strides = [1, 1, 1]} : vector<16x18x128xbf16> to vector<16x16x128xbf16>
    %17 = tpu.concatenate %6, %7, %8, %10, %11, %12, %14, %15, %16 in 2 : vector<16x16x128xbf16>, vector<16x16x128xbf16>, vector<16x16x128xbf16>, vector<16x16x128xbf16>, vector<16x16x128xbf16>, vector<16x16x128xbf16>, vector<16x16x128xbf16>, vector<16x16x128xbf16>, vector<16x16x128xbf16> -> vector<16x16x1152xbf16>
    %18 = vector.shape_cast %17 : vector<16x16x1152xbf16> to vector<256x1152xbf16>
    %c0_2 = arith.constant 0 : index
    %c0_3 = arith.constant 0 : index
    %19 = vector.load %arg4[%c0_2, %c0_3] : memref<1152x128xbf16, #tpu.memory_space<vmem>>, vector<1152x128xbf16>
    %cst = arith.constant dense<0.000000e+00> : vector<256x128xf32>
    %20 = tpu.matmul %18, %19, %cst {dimension_numbers = #tpu.dot_dimension_numbers<[1], [0], [0], [1], [0, 0, 1, 1], [], []>} : vector<256x1152xbf16>, vector<1152x128xbf16>, vector<256x128xf32> -> vector<256x128xf32>
    %21 = vector.shape_cast %20 : vector<256x128xf32> to vector<16x16x128xf32>
    %22 = arith.truncf %21 : vector<16x16x128xf32> to vector<16x16x128xbf16>
    %c0_4 = arith.constant 0 : index
    %c0_5 = arith.constant 0 : index
    %c0_6 = arith.constant 0 : index
    %c0_7 = arith.constant 0 : index
    %23 = vector.load %arg5[%c0_4, %c0_5, %c0_6, %c0_7] : memref<1x16x16x128xbf16, #tpu.memory_space<vmem>>, vector<1x16x16x128xbf16>
    %24 = vector.shape_cast %23 : vector<1x16x16x128xbf16> to vector<16x16x128xbf16>
    %25 = vector.shape_cast %22 : vector<16x16x128xbf16> to vector<1x16x16x128xbf16>
    tpu.vector_store %arg5[%c0_4, %c0_5, %c0_6, %c0_7], %25 {strides = array<i32>} : memref<1x16x16x128xbf16, #tpu.memory_space<vmem>>, vector<1x16x16x128xbf16>,
    %c0_i32 = arith.constant 0 : i32
    %26 = arith.cmpi eq, %arg2, %c0_i32 : i32
    %27 = arith.extui %26 : i1 to i32
    %c0_i32_8 = arith.constant 0 : i32
    %28 = arith.cmpi ne, %27, %c0_i32_8 : i32
    scf.if %28 {
      %cst_17 = arith.constant 0.000000e+00 : f32
      %41 = vector.broadcast %cst_17 : f32 to vector<1x2x128xf32>
      %c0_18 = arith.constant 0 : index
      %c0_19 = arith.constant 0 : index
      %c0_20 = arith.constant 0 : index
      %42 = vector.load %arg6[%c0_18, %c0_19, %c0_20] : memref<1x2x128xf32, #tpu.memory_space<vmem>>, vector<1x2x128xf32>
      tpu.vector_store %arg6[%c0_18, %c0_19, %c0_20], %41 {strides = array<i32>} : memref<1x2x128xf32, #tpu.memory_space<vmem>>, vector<1x2x128xf32>,
    } else {
    }
    %cst_9 = arith.constant dense<0.000000e+00> : vector<128xf32>
    %29 = vector.multi_reduction <add>, %20, %cst_9 [0] : vector<256x128xf32> to vector<128xf32>
    %30 = vector.shape_cast %29 : vector<128xf32> to vector<1x128xf32>
    %31 = arith.mulf %20, %20 : vector<256x128xf32>
    %cst_10 = arith.constant dense<0.000000e+00> : vector<128xf32>
    %32 = vector.multi_reduction <add>, %31, %cst_10 [0] : vector<256x128xf32> to vector<128xf32>
    %33 = vector.shape_cast %32 : vector<128xf32> to vector<1x128xf32>
    %c0_11 = arith.constant 0 : index
    %c0_12 = arith.constant 0 : index
    %c0_13 = arith.constant 0 : index
    %34 = vector.load %arg6[%c0_11, %c0_12, %c0_13] : memref<1x2x128xf32, #tpu.memory_space<vmem>>, vector<1x2x128xf32>
    %35 = vector.shape_cast %34 : vector<1x2x128xf32> to vector<2x128xf32>
    %36 = tpu.concatenate %30, %33 in 0 : vector<1x128xf32>, vector<1x128xf32> -> vector<2x128xf32>
    %37 = arith.addf %35, %36 : vector<2x128xf32>
    %c0_14 = arith.constant 0 : index
    %c0_15 = arith.constant 0 : index
    %c0_16 = arith.constant 0 : index
    %38 = vector.load %arg6[%c0_14, %c0_15, %c0_16] : memref<1x2x128xf32, #tpu.memory_space<vmem>>, vector<1x2x128xf32>
    %39 = vector.shape_cast %38 : vector<1x2x128xf32> to vector<2x128xf32>
    %40 = vector.shape_cast %37 : vector<2x128xf32> to vector<1x2x128xf32>
    tpu.vector_store %arg6[%c0_14, %c0_15, %c0_16], %40 {strides = array<i32>} : memref<1x2x128xf32, #tpu.memory_space<vmem>>, vector<1x2x128xf32>,
    return
  }
  func.func @transform_0(%arg0: i32, %arg1: i32, %arg2: i32) -> (i32, i32, i32, i32) {
    %c0_i32 = arith.constant 0 : i32
    %c0_i32_0 = arith.constant 0 : i32
    %c0_i32_1 = arith.constant 0 : i32
    %c0_i32_2 = arith.constant 0 : i32
    return %arg0, %c0_i32, %c0_i32_0, %c0_i32_1 : i32, i32, i32, i32
  }
  func.func @transform_1(%arg0: i32, %arg1: i32, %arg2: i32) -> (i32, i32) {
    %c0_i32 = arith.constant 0 : i32
    %c0_i32_0 = arith.constant 0 : i32
    return %c0_i32, %arg1 : i32, i32
  }
  func.func @transform_2(%arg0: i32, %arg1: i32, %arg2: i32) -> (i32, i32, i32, i32) {
    %c0_i32 = arith.constant 0 : i32
    %c0_i32_0 = arith.constant 0 : i32
    return %arg0, %arg2, %c0_i32, %arg1 : i32, i32, i32, i32
  }
  func.func @transform_3(%arg0: i32, %arg1: i32, %arg2: i32) -> (i32, i32, i32) {
    %c0_i32 = arith.constant 0 : i32
    %c0_i32_0 = arith.constant 0 : i32
    return %arg0, %c0_i32, %arg1 : i32, i32, i32
  }
}

module attributes {stable_mosaic.version = 11 : i64} {
  func.func @_bn_relu_kernel(%arg0: i32, %arg1: memref<512x128xbf16, #tpu.memory_space<vmem>>, %arg2: memref<1x128xf32, #tpu.memory_space<vmem>>, %arg3: memref<1x128xf32, #tpu.memory_space<vmem>>, %arg4: memref<512x128xf32, #tpu.memory_space<vmem>>) attributes {dimension_semantics = [#tpu.dimension_semantics<parallel>], iteration_bounds = array<i64: 1>, scalar_prefetch = 0 : i64, scratch_operands = 0 : i64, tpu.core_type = #tpu.core_type<tc>, window_params = [{transform_indices = @transform_0, window_bounds = array<i64: 512, 128>}, {pipeline_mode = #tpu.pipeline_mode<synchronous>, transform_indices = @transform_1, window_bounds = array<i64: 1, 128>}, {pipeline_mode = #tpu.pipeline_mode<synchronous>, transform_indices = @transform_2, window_bounds = array<i64: 1, 128>}, {transform_indices = @transform_3, window_bounds = array<i64: 512, 128>}]} {
    %c0 = arith.constant 0 : index
    %c0_0 = arith.constant 0 : index
    %0 = vector.load %arg1[%c0, %c0_0] : memref<512x128xbf16, #tpu.memory_space<vmem>>, vector<512x128xbf16>
    %1 = arith.extf %0 : vector<512x128xbf16> to vector<512x128xf32>
    %c0_1 = arith.constant 0 : index
    %c0_2 = arith.constant 0 : index
    %2 = vector.load %arg2[%c0_1, %c0_2] : memref<1x128xf32, #tpu.memory_space<vmem>>, vector<1x128xf32>
    %3 = vector.broadcast %2 : vector<1x128xf32> to vector<512x128xf32>
    %4 = arith.mulf %1, %3 : vector<512x128xf32>
    %c0_3 = arith.constant 0 : index
    %c0_4 = arith.constant 0 : index
    %5 = vector.load %arg3[%c0_3, %c0_4] : memref<1x128xf32, #tpu.memory_space<vmem>>, vector<1x128xf32>
    %6 = vector.broadcast %5 : vector<1x128xf32> to vector<512x128xf32>
    %7 = arith.addf %4, %6 : vector<512x128xf32>
    %cst = arith.constant 0.000000e+00 : f32
    %8 = vector.broadcast %cst : f32 to vector<512x128xf32>
    %9 = arith.maximumf %7, %8 : vector<512x128xf32>
    %c0_5 = arith.constant 0 : index
    %c0_6 = arith.constant 0 : index
    %10 = vector.load %arg4[%c0_5, %c0_6] : memref<512x128xf32, #tpu.memory_space<vmem>>, vector<512x128xf32>
    tpu.vector_store %arg4[%c0_5, %c0_6], %9 {strides = array<i32>} : memref<512x128xf32, #tpu.memory_space<vmem>>, vector<512x128xf32>,
    return
  }
  func.func @transform_0(%arg0: i32) -> (i32, i32) {
    %c0_i32 = arith.constant 0 : i32
    %c0_i32_0 = arith.constant 0 : i32
    return %arg0, %c0_i32 : i32, i32
  }
  func.func @transform_1(%arg0: i32) -> (i32, i32) {
    %c0_i32 = arith.constant 0 : i32
    %c0_i32_0 = arith.constant 0 : i32
    %c0_i32_1 = arith.constant 0 : i32
    return %c0_i32, %c0_i32_0 : i32, i32
  }
  func.func @transform_2(%arg0: i32) -> (i32, i32) {
    %c0_i32 = arith.constant 0 : i32
    %c0_i32_0 = arith.constant 0 : i32
    %c0_i32_1 = arith.constant 0 : i32
    return %c0_i32, %c0_i32_0 : i32, i32
  }
  func.func @transform_3(%arg0: i32) -> (i32, i32) {
    %c0_i32 = arith.constant 0 : i32
    %c0_i32_0 = arith.constant 0 : i32
    return %arg0, %c0_i32 : i32, i32
  }
}

</mosaic_0001>

<bundles_post_ra>
// kernel: conv_block_forward.3
= control target key start
LH: loop header
LB: loop body
LE: loop exit
PB: predicated region body
PF: predicated region fallthrough
CT: control target
= control target key end

     0   :  { %s1023_s0 = inlined_call_operand.vmem [shape: bf16[512,128], index: 0, kind: input, shape index: {}]   ;;  %s1024_s1 = inlined_call_operand.vmem [shape: f32[1,128], index: 1, kind: input, shape index: {}]   ;;  %s1025_s2 = inlined_call_operand.vmem [shape: f32[1,128], index: 2, kind: input, shape index: {}]   ;;  %s1026_s3 = inlined_call_operand.vmem [shape: f32[512,128], index: 3, kind: output, shape index: {}]  }
   0x1   :  { %v419_v0 = vld [vmem:[%s1023_s0] sm:$0xff]   ;;  %v546_v4 = vld [vmem:[%s1023_s0 + $0x8] sm:$0xff]   ;;  %v547_v5 = vld [vmem:[%s1023_s0 + $0x10] sm:$0xff]  }
   0x2   :  { %v603_v1 = vld [vmem:[%s1024_s1] ss:$0 sm:$0xff]  ;;  %v420_v2 = vunpack.c.l.bf16 %v419_v0  ;;  %v421_v3 = vunpack.c.h.bf16 %v419_v0  ;;  %v548_v6 = vld [vmem:[%s1023_s0 + $0x18] sm:$0xff]   ;;  %v424_v8 = vunpack.c.l.bf16 %v546_v4  ;;  %v425_v9 = vunpack.c.h.bf16 %v546_v4  ;;  %v550_v33 = vld [vmem:[%s1023_s0 + $0x28] sm:$0xff]  }
   0x3   :  { %v617_v7 = vld [vmem:[%s1025_s2] ss:$0 sm:$0xff]  ;;  %v428_v10 = vunpack.c.l.bf16 %v547_v5  ;;  %v429_v11 = vunpack.c.h.bf16 %v547_v5  ;;  %v432_v14 = vunpack.c.l.bf16 %v548_v6  ;;  %v433_v15 = vunpack.c.h.bf16 %v548_v6  ;;  %v551_v34 = vld [vmem:[%s1023_s0 + $0x30] sm:$0xff]   ;;  %v552_v39 = vld [vmem:[%s1023_s0 + $0x38] sm:$0xff]  }
   0x4   :  { %v149_v12 = vmul.f32 %v420_v2, %v603_v1  ;;  %v150_v13 = vmul.f32 %v421_v3, %v603_v1  ;;  %v151_v16 = vmul.f32 %v424_v8, %v603_v1  ;;  %v152_v17 = vmul.f32 %v425_v9, %v603_v1  ;;  %v549_v28 = vld [vmem:[%s1023_s0 + $0x20] sm:$0xff]   ;;  %v554_v6 = vld [vmem:[%s1023_s0 + $0x48] sm:$0xff]   ;;  %v555_v8 = vld [vmem:[%s1023_s0 + $0x50] sm:$0xff]  }
   0x5   :  { %v153_v18 = vmul.f32 %v428_v10, %v603_v1  ;;  %v154_v19 = vmul.f32 %v429_v11, %v603_v1  ;;  %v155_v22 = vmul.f32 %v432_v14, %v603_v1  ;;  %v156_v23 = vmul.f32 %v433_v15, %v603_v1  ;;  %v553_v0 = vld [vmem:[%s1023_s0 + $0x40] sm:$0xff]  }
   0x6   :  { %v220_v20 = vadd.f32 %v617_v7, %v149_v12  ;;  %v221_v21 = vadd.f32 %v617_v7, %v150_v13  ;;  %v222_v24 = vadd.f32 %v617_v7, %v151_v16  ;;  %v223_v25 = vadd.f32 %v617_v7, %v152_v17  ;;  %v556_v13 = vld [vmem:[%s1023_s0 + $0x58] sm:$0xff]  }
   0x7   :  { %v224_v26 = vadd.f32 %v617_v7, %v153_v18  ;;  %v225_v27 = vadd.f32 %v617_v7, %v154_v19  ;;  %v226_v31 = vadd.f32 %v617_v7, %v155_v22  ;;  %v227_v32 = vadd.f32 %v617_v7, %v156_v23 }
   0x8   :  { %v284_v29 = vmax.f32 %v220_v20, 0.0  ;;  %v285_v30 = vmax.f32 %v221_v21, 0.0  ;;  %v286_v35 = vmax.f32 %v222_v24, 0.0  ;;  %v287_v36 = vmax.f32 %v223_v25, 0.0 }
   0x9   :  { %v288_v37 = vmax.f32 %v224_v26, 0.0  ;;  %v289_v38 = vmax.f32 %v225_v27, 0.0  ;;  %v290_v40 = vmax.f32 %v226_v31, 0.0  ;;  %v291_v41 = vmax.f32 %v227_v32, 0.0 }
   0xa   :  { %348 = vst [vmem:[%s1026_s3] sm:$0xff] %v284_v29  ;;  %349 = vst [vmem:[%s1026_s3 + $0x8] sm:$0xff] %v285_v30  ;;  %v436_v42 = vunpack.c.l.bf16 %v549_v28  ;;  %v437_v43 = vunpack.c.h.bf16 %v549_v28  ;;  %v440_v44 = vunpack.c.l.bf16 %v550_v33  ;;  %v441_v45 = vunpack.c.h.bf16 %v550_v33 }
   0xb   :  { %350 = vst [vmem:[%s1026_s3 + $0x10] sm:$0xff] %v286_v35  ;;  %351 = vst [vmem:[%s1026_s3 + $0x18] sm:$0xff] %v287_v36  ;;  %v444_v46 = vunpack.c.l.bf16 %v551_v34  ;;  %v445_v47 = vunpack.c.h.bf16 %v551_v34  ;;  %v448_v50 = vunpack.c.l.bf16 %v552_v39  ;;  %v449_v51 = vunpack.c.h.bf16 %v552_v39 }
   0xc   :  { %352 = vst [vmem:[%s1026_s3 + $0x20] sm:$0xff] %v288_v37  ;;  %353 = vst [vmem:[%s1026_s3 + $0x28] sm:$0xff] %v289_v38  ;;  %v157_v48 = vmul.f32 %v436_v42, %v603_v1  ;;  %v158_v49 = vmul.f32 %v437_v43, %v603_v1  ;;  %v159_v52 = vmul.f32 %v440_v44, %v603_v1  ;;  %v452_v16 = vunpack.c.l.bf16 %v553_v0  ;;  %v557_v38 = vld [vmem:[%s1023_s0 + $0x60] sm:$0xff]   ;;  %v558_v43 = vld [vmem:[%s1023_s0 + $0x68] sm:$0xff]  }
   0xd   :  { %354 = vst [vmem:[%s1026_s3 + $0x30] sm:$0xff] %v290_v40  ;;  %355 = vst [vmem:[%s1026_s3 + $0x38] sm:$0xff] %v291_v41  ;;  %v160_v53 = vmul.f32 %v441_v45, %v603_v1  ;;  %v161_v54 = vmul.f32 %v444_v46, %v603_v1  ;;  %v162_v55 = vmul.f32 %v445_v47, %v603_v1  ;;  %v453_v17 = vunpack.c.h.bf16 %v553_v0  ;;  %v559_v44 = vld [vmem:[%s1023_s0 + $0x70] sm:$0xff]  }
   0xe   :  { %v228_v56 = vadd.f32 %v617_v7, %v157_v48  ;;  %v229_v57 = vadd.f32 %v617_v7, %v158_v49  ;;  %v163_v58 = vmul.f32 %v448_v50, %v603_v1  ;;  %v164_v59 = vmul.f32 %v449_v51, %v603_v1  ;;  %v560_v49 = vld [vmem:[%s1023_s0 + $0x78] sm:$0xff]  }
   0xf   :  { %v230_v60 = vadd.f32 %v617_v7, %v159_v52  ;;  %v231_v61 = vadd.f32 %v617_v7, %v160_v53  ;;  %v232_v62 = vadd.f32 %v617_v7, %v161_v54  ;;  %v233_v63 = vadd.f32 %v617_v7, %v162_v55 }
  0x10   :  { %v292_v2 = vmax.f32 %v228_v56, 0.0  ;;  %v293_v3 = vmax.f32 %v229_v57, 0.0  ;;  %v234_v4 = vadd.f32 %v617_v7, %v163_v58  ;;  %v235_v5 = vadd.f32 %v617_v7, %v164_v59 }
  0x11   :  { %v294_v9 = vmax.f32 %v230_v60, 0.0  ;;  %v295_v10 = vmax.f32 %v231_v61, 0.0  ;;  %v296_v11 = vmax.f32 %v232_v62, 0.0  ;;  %v297_v12 = vmax.f32 %v233_v63, 0.0 }
  0x12   :  { %356 = vst [vmem:[%s1026_s3 + $0x40] sm:$0xff] %v292_v2  ;;  %357 = vst [vmem:[%s1026_s3 + $0x48] sm:$0xff] %v293_v3  ;;  %v298_v14 = vmax.f32 %v234_v4, 0.0  ;;  %v299_v15 = vmax.f32 %v235_v5, 0.0  ;;  %v456_v18 = vunpack.c.l.bf16 %v554_v6  ;;  %v457_v19 = vunpack.c.h.bf16 %v554_v6 }
  0x13   :  { %358 = vst [vmem:[%s1026_s3 + $0x50] sm:$0xff] %v294_v9  ;;  %359 = vst [vmem:[%s1026_s3 + $0x58] sm:$0xff] %v295_v10  ;;  %v460_v20 = vunpack.c.l.bf16 %v555_v8  ;;  %v461_v21 = vunpack.c.h.bf16 %v555_v8  ;;  %v165_v22 = vmul.f32 %v452_v16, %v603_v1  ;;  %v166_v23 = vmul.f32 %v453_v17, %v603_v1  ;;  %v562_v17 = vld [vmem:[%s1023_s0 + $0x88] sm:$0xff]  }
  0x14   :  { %360 = vst [vmem:[%s1026_s3 + $0x60] sm:$0xff] %v296_v11  ;;  %361 = vst [vmem:[%s1026_s3 + $0x68] sm:$0xff] %v297_v12  ;;  %v464_v24 = vunpack.c.l.bf16 %v556_v13  ;;  %v465_v25 = vunpack.c.h.bf16 %v556_v13  ;;  %v167_v26 = vmul.f32 %v456_v18, %v603_v1  ;;  %v168_v27 = vmul.f32 %v457_v19, %v603_v1  ;;  %v561_v12 = vld [vmem:[%s1023_s0 + $0x80] sm:$0xff]   ;;  %v563_v18 = vld [vmem:[%s1023_s0 + $0x90] sm:$0xff]  }
  0x15   :  { %362 = vst [vmem:[%s1026_s3 + $0x70] sm:$0xff] %v298_v14  ;;  %363 = vst [vmem:[%s1026_s3 + $0x78] sm:$0xff] %v299_v15  ;;  %v169_v28 = vmul.f32 %v460_v20, %v603_v1  ;;  %v170_v29 = vmul.f32 %v461_v21, %v603_v1  ;;  %v236_v30 = vadd.f32 %v617_v7, %v165_v22  ;;  %v468_v52 = vunpack.c.l.bf16 %v557_v38 }
  0x16   :  { %v237_v31 = vadd.f32 %v617_v7, %v166_v23  ;;  %v171_v32 = vmul.f32 %v464_v24, %v603_v1  ;;  %v172_v33 = vmul.f32 %v465_v25, %v603_v1  ;;  %v238_v34 = vadd.f32 %v617_v7, %v167_v26  ;;  %v564_v23 = vld [vmem:[%s1023_s0 + $0x98] sm:$0xff]  }
  0x17   :  { %v239_v35 = vadd.f32 %v617_v7, %v168_v27  ;;  %v240_v36 = vadd.f32 %v617_v7, %v169_v28  ;;  %v241_v37 = vadd.f32 %v617_v7, %v170_v29  ;;  %v300_v39 = vmax.f32 %v236_v30, 0.0 }
  0x18   :  { %v301_v40 = vmax.f32 %v237_v31, 0.0  ;;  %v242_v41 = vadd.f32 %v617_v7, %v171_v32  ;;  %v243_v42 = vadd.f32 %v617_v7, %v172_v33  ;;  %v302_v45 = vmax.f32 %v238_v34, 0.0 }
  0x19   :  { %v303_v46 = vmax.f32 %v239_v35, 0.0  ;;  %v304_v47 = vmax.f32 %v240_v36, 0.0  ;;  %v305_v48 = vmax.f32 %v241_v37, 0.0  ;;  %364 = vst [vmem:[%s1026_s3 + $0x80] sm:$0xff] %v300_v39  ;;  %v469_v53 = vunpack.c.h.bf16 %v557_v38 }
  0x1a   :  { %365 = vst [vmem:[%s1026_s3 + $0x88] sm:$0xff] %v301_v40  ;;  %v306_v50 = vmax.f32 %v242_v41, 0.0  ;;  %v307_v51 = vmax.f32 %v243_v42, 0.0  ;;  %366 = vst [vmem:[%s1026_s3 + $0x90] sm:$0xff] %v302_v45  ;;  %v472_v54 = vunpack.c.l.bf16 %v558_v43  ;;  %v473_v55 = vunpack.c.h.bf16 %v558_v43 }
  0x1b   :  { %367 = vst [vmem:[%s1026_s3 + $0x98] sm:$0xff] %v303_v46  ;;  %368 = vst [vmem:[%s1026_s3 + $0xa0] sm:$0xff] %v304_v47  ;;  %v476_v56 = vunpack.c.l.bf16 %v559_v44  ;;  %v477_v57 = vunpack.c.h.bf16 %v559_v44  ;;  %v173_v58 = vmul.f32 %v468_v52, %v603_v1  ;;  %v174_v59 = vmul.f32 %v469_v53, %v603_v1  ;;  %v566_v53 = vld [vmem:[%s1023_s0 + $0xa8] sm:$0xff]  }
  0x1c   :  { %369 = vst [vmem:[%s1026_s3 + $0xa8] sm:$0xff] %v305_v48  ;;  %370 = vst [vmem:[%s1026_s3 + $0xb0] sm:$0xff] %v306_v50  ;;  %v480_v60 = vunpack.c.l.bf16 %v560_v49  ;;  %v481_v61 = vunpack.c.h.bf16 %v560_v49  ;;  %v175_v62 = vmul.f32 %v472_v54, %v603_v1  ;;  %v176_v63 = vmul.f32 %v473_v55, %v603_v1  ;;  %v565_v48 = vld [vmem:[%s1023_s0 + $0xa0] sm:$0xff]   ;;  %v567_v54 = vld [vmem:[%s1023_s0 + $0xb0] sm:$0xff]  }
  0x1d   :  { %371 = vst [vmem:[%s1026_s3 + $0xb8] sm:$0xff] %v307_v51  ;;  %v177_v0 = vmul.f32 %v476_v56, %v603_v1  ;;  %v178_v2 = vmul.f32 %v477_v57, %v603_v1  ;;  %v244_v3 = vadd.f32 %v617_v7, %v173_v58  ;;  %v245_v4 = vadd.f32 %v617_v7, %v174_v59  ;;  %v568_v59 = vld [vmem:[%s1023_s0 + $0xb8] sm:$0xff]  }
  0x1e   :  { %v179_v5 = vmul.f32 %v480_v60, %v603_v1  ;;  %v180_v6 = vmul.f32 %v481_v61, %v603_v1  ;;  %v246_v8 = vadd.f32 %v617_v7, %v175_v62  ;;  %v247_v9 = vadd.f32 %v617_v7, %v176_v63 }
  0x1f   :  { %v248_v10 = vadd.f32 %v617_v7, %v177_v0  ;;  %v249_v11 = vadd.f32 %v617_v7, %v178_v2  ;;  %v308_v13 = vmax.f32 %v244_v3, 0.0  ;;  %v309_v14 = vmax.f32 %v245_v4, 0.0 }
  0x20   :  { %v250_v15 = vadd.f32 %v617_v7, %v179_v5  ;;  %v251_v16 = vadd.f32 %v617_v7, %v180_v6  ;;  %v310_v19 = vmax.f32 %v246_v8, 0.0  ;;  %v311_v20 = vmax.f32 %v247_v9, 0.0 }
  0x21   :  { %v312_v21 = vmax.f32 %v248_v10, 0.0  ;;  %v313_v22 = vmax.f32 %v249_v11, 0.0  ;;  %372 = vst [vmem:[%s1026_s3 + $0xc0] sm:$0xff] %v308_v13  ;;  %373 = vst [vmem:[%s1026_s3 + $0xc8] sm:$0xff] %v309_v14  ;;  %v484_v26 = vunpack.c.l.bf16 %v561_v12  ;;  %v485_v27 = vunpack.c.h.bf16 %v561_v12 }
  0x22   :  { %v314_v24 = vmax.f32 %v250_v15, 0.0  ;;  %v315_v25 = vmax.f32 %v251_v16, 0.0  ;;  %374 = vst [vmem:[%s1026_s3 + $0xd0] sm:$0xff] %v310_v19  ;;  %375 = vst [vmem:[%s1026_s3 + $0xd8] sm:$0xff] %v311_v20  ;;  %v488_v28 = vunpack.c.l.bf16 %v562_v17  ;;  %v489_v29 = vunpack.c.h.bf16 %v562_v17 }
  0x23   :  { %376 = vst [vmem:[%s1026_s3 + $0xe0] sm:$0xff] %v312_v21  ;;  %377 = vst [vmem:[%s1026_s3 + $0xe8] sm:$0xff] %v313_v22  ;;  %v492_v30 = vunpack.c.l.bf16 %v563_v18  ;;  %v493_v31 = vunpack.c.h.bf16 %v563_v18  ;;  %v181_v32 = vmul.f32 %v484_v26, %v603_v1  ;;  %v182_v33 = vmul.f32 %v485_v27, %v603_v1  ;;  %v569_v22 = vld [vmem:[%s1023_s0 + $0xc0] sm:$0xff]   ;;  %v570_v27 = vld [vmem:[%s1023_s0 + $0xc8] sm:$0xff]  }
  0x24   :  { %378 = vst [vmem:[%s1026_s3 + $0xf0] sm:$0xff] %v314_v24  ;;  %379 = vst [vmem:[%s1026_s3 + $0xf8] sm:$0xff] %v315_v25  ;;  %v496_v34 = vunpack.c.l.bf16 %v564_v23  ;;  %v497_v35 = vunpack.c.h.bf16 %v564_v23  ;;  %v183_v36 = vmul.f32 %v488_v28, %v603_v1  ;;  %v184_v37 = vmul.f32 %v489_v29, %v603_v1  ;;  %v571_v28 = vld [vmem:[%s1023_s0 + $0xd0] sm:$0xff]  }
  0x25   :  { %v185_v38 = vmul.f32 %v492_v30, %v603_v1  ;;  %v186_v39 = vmul.f32 %v493_v31, %v603_v1  ;;  %v252_v40 = vadd.f32 %v617_v7, %v181_v32  ;;  %v253_v41 = vadd.f32 %v617_v7, %v182_v33  ;;  %v572_v33 = vld [vmem:[%s1023_s0 + $0xd8] sm:$0xff]  }
  0x26   :  { %v187_v42 = vmul.f32 %v496_v34, %v603_v1  ;;  %v188_v43 = vmul.f32 %v497_v35, %v603_v1  ;;  %v254_v44 = vadd.f32 %v617_v7, %v183_v36  ;;  %v255_v45 = vadd.f32 %v617_v7, %v184_v37 }
  0x27   :  { %v256_v46 = vadd.f32 %v617_v7, %v185_v38  ;;  %v257_v47 = vadd.f32 %v617_v7, %v186_v39  ;;  %v316_v49 = vmax.f32 %v252_v40, 0.0  ;;  %v317_v50 = vmax.f32 %v253_v41, 0.0 }
  0x28   :  { %v258_v51 = vadd.f32 %v617_v7, %v187_v42  ;;  %v259_v52 = vadd.f32 %v617_v7, %v188_v43  ;;  %v318_v55 = vmax.f32 %v254_v44, 0.0  ;;  %v319_v56 = vmax.f32 %v255_v45, 0.0 }
  0x29   :  { %v320_v57 = vmax.f32 %v256_v46, 0.0  ;;  %v321_v58 = vmax.f32 %v257_v47, 0.0  ;;  %380 = vst [vmem:[%s1026_s3 + $0x100] sm:$0xff] %v316_v49  ;;  %381 = vst [vmem:[%s1026_s3 + $0x108] sm:$0xff] %v317_v50  ;;  %v500_v62 = vunpack.c.l.bf16 %v565_v48  ;;  %v501_v63 = vunpack.c.h.bf16 %v565_v48 }
  0x2a   :  { %v322_v60 = vmax.f32 %v258_v51, 0.0  ;;  %v323_v61 = vmax.f32 %v259_v52, 0.0  ;;  %382 = vst [vmem:[%s1026_s3 + $0x110] sm:$0xff] %v318_v55  ;;  %383 = vst [vmem:[%s1026_s3 + $0x118] sm:$0xff] %v319_v56  ;;  %v504_v0 = vunpack.c.l.bf16 %v566_v53  ;;  %v505_v2 = vunpack.c.h.bf16 %v566_v53 }
  0x2b   :  { %384 = vst [vmem:[%s1026_s3 + $0x120] sm:$0xff] %v320_v57  ;;  %385 = vst [vmem:[%s1026_s3 + $0x128] sm:$0xff] %v321_v58  ;;  %v508_v3 = vunpack.c.l.bf16 %v567_v54  ;;  %v509_v4 = vunpack.c.h.bf16 %v567_v54  ;;  %v189_v5 = vmul.f32 %v500_v62, %v603_v1  ;;  %v190_v6 = vmul.f32 %v501_v63, %v603_v1  ;;  %v573_v58 = vld [vmem:[%s1023_s0 + $0xe0] sm:$0xff]   ;;  %v574_v63 = vld [vmem:[%s1023_s0 + $0xe8] sm:$0xff]  }
  0x2c   :  { %386 = vst [vmem:[%s1026_s3 + $0x130] sm:$0xff] %v322_v60  ;;  %387 = vst [vmem:[%s1026_s3 + $0x138] sm:$0xff] %v323_v61  ;;  %v512_v8 = vunpack.c.l.bf16 %v568_v59  ;;  %v513_v9 = vunpack.c.h.bf16 %v568_v59  ;;  %v191_v10 = vmul.f32 %v504_v0, %v603_v1  ;;  %v192_v11 = vmul.f32 %v505_v2, %v603_v1  ;;  %v575_v0 = vld [vmem:[%s1023_s0 + $0xf0] sm:$0xff]  }
  0x2d   :  { %v193_v12 = vmul.f32 %v508_v3, %v603_v1  ;;  %v194_v13 = vmul.f32 %v509_v4, %v603_v1  ;;  %v260_v14 = vadd.f32 %v617_v7, %v189_v5  ;;  %v261_v15 = vadd.f32 %v617_v7, %v190_v6  ;;  %v576_v6 = vld [vmem:[%s1023_s0 + $0xf8] sm:$0xff]  }
  0x2e   :  { %v195_v16 = vmul.f32 %v512_v8, %v603_v1  ;;  %v196_v17 = vmul.f32 %v513_v9, %v603_v1  ;;  %v262_v18 = vadd.f32 %v617_v7, %v191_v10  ;;  %v263_v19 = vadd.f32 %v617_v7, %v192_v11 }
  0x2f   :  { %v264_v20 = vadd.f32 %v617_v7, %v193_v12  ;;  %v265_v21 = vadd.f32 %v617_v7, %v194_v13  ;;  %v324_v23 = vmax.f32 %v260_v14, 0.0  ;;  %v325_v24 = vmax.f32 %v261_v15, 0.0 }
  0x30   :  { %v266_v25 = vadd.f32 %v617_v7, %v195_v16  ;;  %v267_v26 = vadd.f32 %v617_v7, %v196_v17  ;;  %v326_v29 = vmax.f32 %v262_v18, 0.0  ;;  %v327_v30 = vmax.f32 %v263_v19, 0.0 }
  0x31   :  { %v328_v31 = vmax.f32 %v264_v20, 0.0  ;;  %v329_v32 = vmax.f32 %v265_v21, 0.0  ;;  %388 = vst [vmem:[%s1026_s3 + $0x140] sm:$0xff] %v324_v23  ;;  %389 = vst [vmem:[%s1026_s3 + $0x148] sm:$0xff] %v325_v24  ;;  %v516_v36 = vunpack.c.l.bf16 %v569_v22  ;;  %v517_v37 = vunpack.c.h.bf16 %v569_v22 }
  0x32   :  { %v330_v34 = vmax.f32 %v266_v25, 0.0  ;;  %v331_v35 = vmax.f32 %v267_v26, 0.0  ;;  %390 = vst [vmem:[%s1026_s3 + $0x150] sm:$0xff] %v326_v29  ;;  %391 = vst [vmem:[%s1026_s3 + $0x158] sm:$0xff] %v327_v30  ;;  %v520_v38 = vunpack.c.l.bf16 %v570_v27  ;;  %v521_v39 = vunpack.c.h.bf16 %v570_v27 }
  0x33   :  { %392 = vst [vmem:[%s1026_s3 + $0x160] sm:$0xff] %v328_v31  ;;  %393 = vst [vmem:[%s1026_s3 + $0x168] sm:$0xff] %v329_v32  ;;  %v524_v40 = vunpack.c.l.bf16 %v571_v28  ;;  %v525_v41 = vunpack.c.h.bf16 %v571_v28  ;;  %v197_v42 = vmul.f32 %v516_v36, %v603_v1  ;;  %v198_v43 = vmul.f32 %v517_v37, %v603_v1 }
  0x34   :  { %394 = vst [vmem:[%s1026_s3 + $0x170] sm:$0xff] %v330_v34  ;;  %395 = vst [vmem:[%s1026_s3 + $0x178] sm:$0xff] %v331_v35  ;;  %v528_v44 = vunpack.c.l.bf16 %v572_v33  ;;  %v529_v45 = vunpack.c.h.bf16 %v572_v33  ;;  %v199_v46 = vmul.f32 %v520_v38, %v603_v1  ;;  %v200_v47 = vmul.f32 %v521_v39, %v603_v1 }
  0x35   :  { %v201_v48 = vmul.f32 %v524_v40, %v603_v1  ;;  %v202_v49 = vmul.f32 %v525_v41, %v603_v1  ;;  %v268_v50 = vadd.f32 %v617_v7, %v197_v42  ;;  %v269_v51 = vadd.f32 %v617_v7, %v198_v43 }
  0x36   :  { %v203_v52 = vmul.f32 %v528_v44, %v603_v1  ;;  %v204_v53 = vmul.f32 %v529_v45, %v603_v1  ;;  %v270_v54 = vadd.f32 %v617_v7, %v199_v46  ;;  %v271_v55 = vadd.f32 %v617_v7, %v200_v47 }
  0x37   :  { %v272_v56 = vadd.f32 %v617_v7, %v201_v48  ;;  %v273_v57 = vadd.f32 %v617_v7, %v202_v49  ;;  %v332_v59 = vmax.f32 %v268_v50, 0.0  ;;  %v333_v60 = vmax.f32 %v269_v51, 0.0 }
  0x38   :  { %v274_v61 = vadd.f32 %v617_v7, %v203_v52  ;;  %v275_v62 = vadd.f32 %v617_v7, %v204_v53  ;;  %v334_v2 = vmax.f32 %v270_v54, 0.0  ;;  %v335_v3 = vmax.f32 %v271_v55, 0.0 }
  0x39   :  { %v336_v4 = vmax.f32 %v272_v56, 0.0  ;;  %v337_v5 = vmax.f32 %v273_v57, 0.0  ;;  %396 = vst [vmem:[%s1026_s3 + $0x180] sm:$0xff] %v332_v59  ;;  %397 = vst [vmem:[%s1026_s3 + $0x188] sm:$0xff] %v333_v60  ;;  %v532_v10 = vunpack.c.l.bf16 %v573_v58  ;;  %v533_v11 = vunpack.c.h.bf16 %v573_v58 }
  0x3a   :  { %v338_v8 = vmax.f32 %v274_v61, 0.0  ;;  %v339_v9 = vmax.f32 %v275_v62, 0.0  ;;  %398 = vst [vmem:[%s1026_s3 + $0x190] sm:$0xff] %v334_v2  ;;  %399 = vst [vmem:[%s1026_s3 + $0x198] sm:$0xff] %v335_v3  ;;  %v536_v12 = vunpack.c.l.bf16 %v574_v63  ;;  %v537_v13 = vunpack.c.h.bf16 %v574_v63 }
  0x3b   :  { %400 = vst [vmem:[%s1026_s3 + $0x1a0] sm:$0xff] %v336_v4  ;;  %401 = vst [vmem:[%s1026_s3 + $0x1a8] sm:$0xff] %v337_v5  ;;  %v540_v14 = vunpack.c.l.bf16 %v575_v0  ;;  %v541_v15 = vunpack.c.h.bf16 %v575_v0  ;;  %v205_v16 = vmul.f32 %v532_v10, %v603_v1  ;;  %v206_v17 = vmul.f32 %v533_v11, %v603_v1 }
  0x3c   :  { %402 = vst [vmem:[%s1026_s3 + $0x1b0] sm:$0xff] %v338_v8  ;;  %403 = vst [vmem:[%s1026_s3 + $0x1b8] sm:$0xff] %v339_v9  ;;  %v544_v18 = vunpack.c.l.bf16 %v576_v6  ;;  %v545_v19 = vunpack.c.h.bf16 %v576_v6  ;;  %v207_v20 = vmul.f32 %v536_v12, %v603_v1  ;;  %v208_v21 = vmul.f32 %v537_v13, %v603_v1 }
  0x3d   :  { %v209_v22 = vmul.f32 %v540_v14, %v603_v1  ;;  %v210_v23 = vmul.f32 %v541_v15, %v603_v1  ;;  %v276_v24 = vadd.f32 %v617_v7, %v205_v16  ;;  %v277_v25 = vadd.f32 %v617_v7, %v206_v17 }
  0x3e   :  { %v211_v26 = vmul.f32 %v544_v18, %v603_v1  ;;  %v212_v27 = vmul.f32 %v545_v19, %v603_v1  ;;  %v278_v28 = vadd.f32 %v617_v7, %v207_v20  ;;  %v279_v29 = vadd.f32 %v617_v7, %v208_v21 }
  0x3f   :  { %v280_v30 = vadd.f32 %v617_v7, %v209_v22  ;;  %v281_v31 = vadd.f32 %v617_v7, %v210_v23  ;;  %v340_v32 = vmax.f32 %v276_v24, 0.0  ;;  %v341_v33 = vmax.f32 %v277_v25, 0.0 }
  0x40   :  { %v282_v34 = vadd.f32 %v617_v7, %v211_v26  ;;  %v283_v35 = vadd.f32 %v617_v7, %v212_v27  ;;  %v342_v36 = vmax.f32 %v278_v28, 0.0  ;;  %v343_v37 = vmax.f32 %v279_v29, 0.0 }
  0x41   :  { %v344_v38 = vmax.f32 %v280_v30, 0.0  ;;  %v345_v39 = vmax.f32 %v281_v31, 0.0  ;;  %404 = vst [vmem:[%s1026_s3 + $0x1c0] sm:$0xff] %v340_v32  ;;  %405 = vst [vmem:[%s1026_s3 + $0x1c8] sm:$0xff] %v341_v33 }
  0x42   :  { %v346_v1 = vmax.f32 %v282_v34, 0.0  ;;  %v347_v40 = vmax.f32 %v283_v35, 0.0  ;;  %406 = vst [vmem:[%s1026_s3 + $0x1d0] sm:$0xff] %v342_v36  ;;  %407 = vst [vmem:[%s1026_s3 + $0x1d8] sm:$0xff] %v343_v37 }
  0x43   :  { %408 = vst [vmem:[%s1026_s3 + $0x1e0] sm:$0xff] %v344_v38  ;;  %409 = vst [vmem:[%s1026_s3 + $0x1e8] sm:$0xff] %v345_v39 }
  0x44   :  { %410 = vst [vmem:[%s1026_s3 + $0x1f0] sm:$0xff] %v346_v1  ;;  %411 = vst [vmem:[%s1026_s3 + $0x1f8] sm:$0xff] %v347_v40 }

// kernel: conv_block_forward.2
= control target key start
LH: loop header
LB: loop body
LE: loop exit
PB: predicated region body
PF: predicated region fallthrough
CT: control target
= control target key end

     0   :  { %s3591_s12 = smov 0   ;;  %s3593_s13 = smov 0   ;;  %s4643_s0 = inlined_call_operand.vmem [shape: bf16[2,18,18,128], index: 0, kind: input, shape index: {}]   ;;  %s4644_s1 = inlined_call_operand.vmem [shape: bf16[1152,128], index: 1, kind: input, shape index: {}]   ;;  %s4645_s2 = inlined_call_operand.vmem [shape: bf16[2,16,16,128], index: 2, kind: output, shape index: {0}]   ;;  %s4646_s3 = inlined_call_operand.vmem [shape: f32[2,2,128], index: 3, kind: output, shape index: {1}]  }
   0x1   :  { %s3595_s14 = smov 0  }
   0x2 LB: > { %s33_s15 = sadd.s32 1, %s3564_s13  ;;  %p2596_p0 = scmp.ge.s32.totalorder %s3568_s14, 1  ;;  %s3568_s14 = sphi %s3595_s14, %s14_s14   ;;  %s3564_s13 = sphi %s3593_s13, %s4648_s13   ;;  %s3560_s12 = sphi %s3591_s12, %s4647_s12  }
   0x3   : > { %p35_p1 = scmp.ge.s32.totalorder %s33_s15, 2  ;;  %p174_p2 = scmp.lt.s32.totalorder %s3568_s14, 3 }
   0x5   : > { %s4650_s15 = smov (%p35_p1, %s33_s15), 0  ;;  %p175_p3 = pnand %p2596_p0, %p174_p2 }
   0x6   : > { %v3433_v0 = vld [vmem:[%s4644_s1 + $0x40] sm:$0xff] (!%p175_p3)   ;;  %v3435_v2 = vld [vmem:[%s4644_s1 + $0x48] sm:$0xff] (!%p175_p3)   ;;  %p217_p4 = scmp.lt.s32.totalorder (!%p175_p3), %s3560_s12, 1  ;;  %v3437_v4 = vld [vmem:[%s4644_s1 + $0x50] sm:$0xff] (!%p175_p3)   ;;  %vm450_vm0 = vsmask.f32 (!%p175_p3), 7424 }
   0x7   : > { %178 = sbr.rel (%p175_p3) target bundleno = 561 (0x231), region = 28  ;;  %v3434_v1 = vld [vmem:[%s4644_s1] sm:$0xff] (!%p175_p3)   ;;  %2871 = vmatprep.subr.bf16.mxu0 (!%p175_p3), %v3433_v0  ;;  %3391 = vmatprep.subr.bf16.mxu1 (!%p175_p3), %v3433_v0  ;;  %v3436_v3 = vld [vmem:[%s4644_s1 + $0x8] sm:$0xff] (!%p175_p3)   ;;  %v3438_v5 = vld [vmem:[%s4644_s1 + $0x10] sm:$0xff] (!%p175_p3)   ;;  %vm659_vm1 = vcmask (!%p175_p3), 1046528   ;;  %vm2429_vm2 = vcmask (!%p175_p3), 1040384  }
   0x8   : > { %2872 = vmatpush3.bf16.msra.mxu0 (!%p175_p3), %v3434_v1  ;;  %3399 = vmatpush3.bf16.msra.mxu1 (!%p175_p3), %v3434_v1  ;;  %v3439_v6 = vld [vmem:[%s4644_s1 + $0x58] sm:$0xff] (!%p175_p3)   ;;  %v3441_v8 = vld [vmem:[%s4644_s1 + $0x60] sm:$0xff] (!%p175_p3)   ;;  %v3443_v10 = vld [vmem:[%s4644_s1 + $0x68] sm:$0xff] (!%p175_p3)  }
   0x9   : > { %2873 = vmatprep.subr.bf16.mxu0 (!%p175_p3), %v3435_v2  ;;  %3392 = vmatprep.subr.bf16.mxu1 (!%p175_p3), %v3435_v2  ;;  %v3440_v7 = vld [vmem:[%s4644_s1 + $0x18] sm:$0xff] (!%p175_p3)   ;;  %v3442_v9 = vld [vmem:[%s4644_s1 + $0x20] sm:$0xff] (!%p175_p3)   ;;  %v3444_v11 = vld [vmem:[%s4644_s1 + $0x28] sm:$0xff] (!%p175_p3)  }
   0xa   : > { %v3445_v18 = vld [vmem:[%s4644_s1 + $0x70] sm:$0xff] (!%p175_p3)   ;;  %v3447_v28 = vld [vmem:[%s4644_s1 + $0x78] sm:$0xff] (!%p175_p3)   ;;  %v3453_v33 = vld [vmem:[%s4644_s1 + $0xc0] sm:$0xff] (!%p175_p3)  }
   0xb   : > { %v3446_v25 = vld [vmem:[%s4644_s1 + $0x30] sm:$0xff] (!%p175_p3)   ;;  %v3448_v30 = vld [vmem:[%s4644_s1 + $0x38] sm:$0xff] (!%p175_p3)   ;;  %v3454_v34 = vld [vmem:[%s4644_s1 + $0x140] sm:$0xff] (!%p175_p3)  }
   0xc   : > { %2874 = vmatpush3.bf16.msra.mxu0 (!%p175_p3), %v3436_v3  ;;  %3400 = vmatpush3.bf16.msra.mxu1 (!%p175_p3), %v3436_v3  ;;  %v3455_v39 = vld [vmem:[%s4644_s1 + $0x80] sm:$0xff] (!%p175_p3)   ;;  %v3457_v48 = vld [vmem:[%s4644_s1 + $0xc8] sm:$0xff] (!%p175_p3)   ;;  %v3463_v59 = vld [vmem:[%s4644_s1 + $0xd0] sm:$0xff] (!%p175_p3)  }
   0xd   : > { %2875 = vmatprep.subr.bf16.mxu0 (!%p175_p3), %v3437_v4  ;;  %3393 = vmatprep.subr.bf16.mxu1 (!%p175_p3), %v3437_v4  ;;  %v3456_v46 = vld [vmem:[%s4644_s1 + $0x100] sm:$0xff] (!%p175_p3)   ;;  %v3458_v53 = vld [vmem:[%s4644_s1 + $0x88] sm:$0xff] (!%p175_p3)   ;;  %v3464_v60 = vld [vmem:[%s4644_s1 + $0x90] sm:$0xff] (!%p175_p3)  }
   0xe   : > { %s4652_s12 = smov (!%p217_p4, %s3560_s12), 1  ;;  %v3466_v57 = vld [vmem:[%s4644_s1 + $0x148] sm:$0xff]   ;;  %v3465_v62 = vld [vmem:[%s4644_s1 + $0xd8] sm:$0xff]  }
   0xf   : > { %s3407_s30 = smul.u32 216, %s4652_s12  ;;  %v3468_v61 = vld [vmem:[%s4644_s1 + $0x108] sm:$0xff]   ;;  %s2743_s7 = sshll.u32 %s4652_s12, 7 }
  0x10   : > { %2876 = vmatpush3.bf16.msra.mxu0 %v3438_v5  ;;  %3401 = vmatpush3.bf16.msra.mxu1 %v3438_v5  ;;  %s4570_s10 = scalar_lea.vmem %s4645_s2, %s2743_s7 }
  0x11   : > { %2877 = vmatprep.subr.bf16.mxu0 %v3439_v6  ;;  %3394 = vmatprep.subr.bf16.mxu1 %v3439_v6  ;;  %s3645_s16 = scalar_lea.vmem %s4643_s0, %s3407_s30 }
  0x12   : > { %v3654_v12 = vld [vmem:[%s3645_s16] sm:$0xff]   ;;  %v3657_v13 = vld [vmem:[%s3645_s16 + $0x8] ss:$0 sps:$4 sm:$0x11]   ;;  %v3451_v17 = vld [vmem:[%s3645_s16 + $0x90] sm:$0xff]  }
  0x13   : > { %v452_v14 = vshrl.u32 %v3654_v12, 16  ;;  %v454_v15 = vshll.u32 %v3654_v12, 16  ;;  %v459_v16 = vshll.u32 %v3657_v13, 16  ;;  %v3452_v19 = vld [vmem:[%s3645_s16 + $0x98] ss:$0 sps:$4 sm:$0x11]  }
  0x14   : > { %2878 = vmatpush3.bf16.msra.mxu0 %v3440_v7  ;;  %3402 = vmatpush3.bf16.msra.mxu1 %v3440_v7  ;;  %v596_v22 = vshrl.u32 %v3451_v17, 16  ;;  %v598_v23 = vshll.u32 %v3451_v17, 16  ;;  %v603_v24 = vshll.u32 %v3452_v19, 16  ;;  %v3687_v36 = vld [vmem:[%s3645_s16 + $0xc] sm:$0xff]   ;;  %v3693_v38 = vld [vmem:[%s3645_s16 + $0x9c] sm:$0xff]  }
  0x15   : > { %2879 = vmatprep.subr.bf16.mxu0 %v3441_v8  ;;  %3395 = vmatprep.subr.bf16.mxu1 %v3441_v8  ;;  %v456_v20 = vrot.slane %v454_v15, 1  ;;  %v461_v21 = vrot.slane %v459_v16, 1  ;;  %v3690_v37 = vld [vmem:[%s3645_s16 + $0x14] ss:$0 sps:$4 sm:$0x11]   ;;  %v464_v40 = vshrl.u32 %v3687_v36, 16 }
  0x16   : > { %v600_v27 = vrot.slane %v598_v23, 1  ;;  %v605_v29 = vrot.slane %v603_v24, 1  ;;  %v466_v41 = vshll.u32 %v3687_v36, 16  ;;  %v471_v42 = vshll.u32 %v3690_v37, 16  ;;  %v3742_v63 = vld [vmem:[%s3645_s16 + $0x18] sm:$0xff]   ;;  %v3751_v4 = vld [vmem:[%s3645_s16 + $0xa8] sm:$0xff]  }
  0x17   : > { %v457_v26 = vor.u32 %v456_v20, %v452_v14  ;;  %v3703_v43 = vld [vmem:[%s3645_s16 + $0xa4] ss:$0 sps:$4 sm:$0x11]   ;;  %v608_v44 = vshrl.u32 %v3693_v38, 16  ;;  %v610_v45 = vshll.u32 %v3693_v38, 16  ;;  %v476_v1 = vshrl.u32 %v3742_v63, 16 }
  0x18   : > { %2880 = vmatpush3.bf16.msra.mxu0 %v3442_v9  ;;  %3403 = vmatpush3.bf16.msra.mxu1 %v3442_v9  ;;  %v601_v32 = vor.u32 %v600_v27, %v596_v22  ;;  %v468_v47 = vrot.slane %v466_v41, 1  ;;  %v473_v49 = vrot.slane %v471_v42, 1  ;;  %v615_v51 = vshll.u32 %v3703_v43, 16  ;;  %v3745_v0 = vld [vmem:[%s3645_s16 + $0x20] ss:$0 sps:$4 sm:$0x11]  }
  0x19   : > { %2881 = vmatprep.subr.bf16.mxu0 %v3443_v10  ;;  %3396 = vmatprep.subr.bf16.mxu1 %v3443_v10  ;;  %v462_v31 = vsel %vm450_vm0, %v457_v26, %v461_v21  ;;  %v612_v50 = vrot.slane %v610_v45, 1  ;;  %v478_v2 = vshll.u32 %v3742_v63, 16  ;;  %v483_v3 = vshll.u32 %v3745_v0, 16  ;;  %v3754_v5 = vld [vmem:[%s3645_s16 + $0xb0] ss:$0 sps:$4 sm:$0x11]  }
  0x1a   : > { %1384 = vmatprep.mubr.bf16.mxu0 %v462_v31  ;;  %v3684_v35 = vsel %vm450_vm0, %v601_v32, %v605_v29  ;;  %v469_v52 = vor.u32 %v468_v47, %v464_v40  ;;  %v617_v55 = vrot.slane %v615_v51, 1  ;;  %v620_v8 = vshrl.u32 %v3751_v4, 16  ;;  %v3467_v10 = vld [vmem:[%s4644_s1 + $0x98] sm:$0xff]   ;;  %v3473_v16 = vld [vmem:[%s4644_s1 + $0xe0] sm:$0xff]   ;;  %v3475_v21 = vld [vmem:[%s4644_s1 + $0xe8] sm:$0xff]  }
  0x1b   : > { %1480 = vmatprep.mubr.bf16.mxu1 %v3684_v35  ;;  %v613_v54 = vor.u32 %v612_v50, %v608_v44  ;;  %v480_v6 = vrot.slane %v478_v2, 1  ;;  %v485_v7 = vrot.slane %v483_v3, 1  ;;  %v622_v9 = vshll.u32 %v3751_v4, 16  ;;  %v3777_v22 = vld [vmem:[%s3645_s16 + $0x24] sm:$0xff]   ;;  %v3784_v24 = vld [vmem:[%s3645_s16 + $0xb4] sm:$0xff]  }
  0x1c   : > { %2882 = vmatpush3.bf16.msra.mxu0 %v3444_v11  ;;  %3404 = vmatpush3.bf16.msra.mxu1 %v3444_v11  ;;  %v3719_v56 = vsel %vm450_vm0, %v469_v52, %v473_v49  ;;  %v627_v11 = vshll.u32 %v3754_v5, 16  ;;  %v3781_v23 = vld [vmem:[%s3645_s16 + $0x2c] ss:$0 sps:$4 sm:$0x11]   ;;  %v488_v26 = vshrl.u32 %v3777_v22, 16  ;;  %v490_v27 = vshll.u32 %v3777_v22, 16 }
  0x1d   : > { %2883 = vmatprep.subr.bf16.mxu0 %v3445_v18  ;;  %3397 = vmatprep.subr.bf16.mxu1 %v3445_v18  ;;  %v3726_v58 = vsel %vm450_vm0, %v613_v54, %v617_v55  ;;  %v481_v14 = vor.u32 %v480_v6, %v476_v1  ;;  %v624_v15 = vrot.slane %v622_v9, 1  ;;  %v3474_v18 = vld [vmem:[%s4644_s1 + $0xa0] sm:$0xff]   ;;  %v495_v29 = vshll.u32 %v3781_v23, 16  ;;  %v3482_v42 = vld [vmem:[%s4644_s1 + $0x150] sm:$0xff]   ;;  %v3491_v6 = vld [vmem:[%s4644_s1 + $0x158] sm:$0xff]  }
  0x1e   : > { %v632_v31 = vshrl.u32 %v3784_v24, 16  ;;  %v634_v32 = vshll.u32 %v3784_v24, 16  ;;  %v661_v45 = vrot.slane %v3657_v13, 1  ;;  %v3484_v49 = vld [vmem:[%s4644_s1 + $0x110] sm:$0xff]   ;;  %v660_v50 = vrot.slane %v3654_v12, 1  ;;  %v3490_v3 = vld [vmem:[%s4644_s1 + $0x180] sm:$0xff]  }
  0x1f   : > { %v3771_v19 = vsel %vm450_vm0, %v481_v14, %v485_v7  ;;  %v625_v20 = vor.u32 %v624_v15, %v620_v8  ;;  %v3483_v13 = vld [vmem:[%s4644_s1 + $0xb0] sm:$0xff]   ;;  %v663_v52 = vrot.slane %v3687_v36, 1  ;;  %v3835_v55 = vld [vmem:[%s3645_s16 + $0x38] ss:$0 sps:$4 sm:$0x11]   ;;  %v3861_v9 = vld [vmem:[%s3645_s16 + $0x3c] sm:$0xff]  }
  0x20   : > { %2884 = vmatpush3.bf16.msra.mxu0 %v3446_v25  ;;  %3405 = vmatpush3.bf16.msra.mxu1 %v3446_v25  ;;  %v636_v40 = vrot.slane %v634_v32, 1  ;;  %v3832_v54 = vld [vmem:[%s3645_s16 + $0x30] sm:$0xff]   ;;  %v662_v8 = vsel %vm659_vm1, %v660_v50, %v661_v45  ;;  %v512_v14 = vshrl.u32 %v3861_v9, 16  ;;  %v514_v15 = vshll.u32 %v3861_v9, 16 }
  0x21   : > { %2885 = vmatprep.subr.bf16.mxu0 %v3447_v28  ;;  %3398 = vmatprep.subr.bf16.mxu1 %v3447_v28  ;;  %v3476_v28 = vld [vmem:[%s4644_s1 + $0xa8] sm:$0xff]   ;;  %v667_v45 = vrot.slane %v3745_v0, 1 }
  0x24   : > { %2886 = vmatpush3.bf16.msra.mxu0 %v3448_v30  ;;  %3406 = vmatpush3.bf16.msra.mxu1 %v3448_v30  ;;  %v3797_v30 = vld [vmem:[%s3645_s16 + $0xbc] ss:$0 sps:$4 sm:$0x11]  }
  0x25   : > { %2983 = vmatprep.subr.bf16.mxu1 %v3453_v33  ;;  %3095 = vmatprep.subr.bf16.mxu0 %v3454_v34  ;;  %v492_v33 = vrot.slane %v490_v27, 1  ;;  %v3481_v34 = vld [vmem:[%s4644_s1 + $0xf0] sm:$0xff]   ;;  %v639_v41 = vshll.u32 %v3797_v30, 16 }
  0x27   : > { %1385 = vmatmul.mubr.bf16.vlgmr.msra.gmra.mrb[0].mxu0 %v3654_v12  ;;  %1481 = vmatmul.mubr.bf16.vlgmr.msra.gmra.mrb[0].mxu1 %v3451_v17  ;;  %v629_v17 = vrot.slane %v627_v11, 1  ;;  %v493_v44 = vor.u32 %v492_v33, %v488_v26  ;;  %v641_v47 = vrot.slane %v639_v41, 1  ;;  %v664_v12 = vrot.slane %v3690_v37, 1 }
  0x28   : > { %2984 = vmatpush3.bf16.msra.mxu1 %v3455_v39  ;;  %3096 = vmatpush3.bf16.msra.mxu0 %v3456_v46  ;;  %v497_v39 = vrot.slane %v495_v29, 1  ;;  %v637_v46 = vor.u32 %v636_v40, %v632_v31  ;;  %v502_v37 = vshll.u32 %v3832_v54, 16  ;;  %v3498_v31 = vld [vmem:[%s4644_s1 + $0x1c8] sm:$0xff]  }
  0x29   : > { %2985 = vmatprep.subr.bf16.mxu1 %v3457_v48  ;;  %1392 = vmatprep.mubr.bf16.mxu0 %v3719_v56  ;;  %v3787_v25 = vsel %vm450_vm0, %v625_v20, %v629_v17  ;;  %v3873_v17 = vld [vmem:[%s3645_s16 + $0x48] sm:$0xff]   ;;  %v3497_v20 = vld [vmem:[%s4644_s1 + $0x160] sm:$0xff]  }
  0x2a   : > { %1488 = vmatprep.mubr.bf16.mxu1 %v3726_v58  ;;  %3097 = vmatprep.subr.bf16.mxu0 %v3466_v57  ;;  %v3812_v48 = vsel %vm450_vm0, %v493_v44, %v497_v39  ;;  %v3820_v51 = vsel %vm450_vm0, %v637_v46, %v641_v47  ;;  %v3486_v57 = vld [vmem:[%s4644_s1 + $0xb8] sm:$0xff]   ;;  %v504_v1 = vrot.slane %v502_v37, 1  ;;  %v524_v27 = vshrl.u32 %v3873_v17, 16  ;;  %v3500_v40 = vld [vmem:[%s4644_s1 + $0x188] sm:$0xff]   ;;  %v3507_v37 = vld [vmem:[%s4644_s1 + $0x1d0] sm:$0xff]  }
  0x2b   : > { %v3904_v46 = vld [vmem:[%s3645_s16 + $0x54] sm:$0xff]   ;;  %v3908_v47 = vld [vmem:[%s3645_s16 + $0x5c] ss:$0 sps:$4 sm:$0x11]  }
  0x2c   : > { %2986 = vmatpush3.bf16.msra.mxu1 %v3458_v53  ;;  %3098 = vmatpush3.bf16.msra.mxu0 %v3468_v61  ;;  %v3485_v53 = vld [vmem:[%s4644_s1 + $0xf8] sm:$0xff]   ;;  %v507_v61 = vshll.u32 %v3835_v55, 16  ;;  %v538_v0 = vshll.u32 %v3904_v46, 16 }
  0x2d   : > { %2987 = vmatprep.subr.bf16.mxu1 %v3463_v59  ;;  %3099 = vmatprep.subr.bf16.mxu0 %v3482_v42  ;;  %v666_v59 = vrot.slane %v3742_v63, 1  ;;  %v3900_v42 = vsel %vm659_vm1, %v663_v52, %v664_v12  ;;  %v543_v52 = vshll.u32 %v3908_v47, 16 }
  0x2e   : > { %v509_v2 = vrot.slane %v507_v61, 1  ;;  %v540_v12 = vrot.slane %v538_v0, 1  ;;  %v3997_v0 = vld [vmem:[%s3645_s16 + $0x80] ss:$0 sps:$4 sm:$0x11]  }
  0x2f   : > { %1393 = vmatmul.mubr.bf16.gmra.mrb[4].mxu0 %v3687_v36  ;;  %1489 = vmatmul.mubr.bf16.gmra.mrb[4].mxu1 %v3693_v38 }
  0x30   : > { %2988 = vmatpush3.bf16.msra.mxu1 %v3464_v60  ;;  %1400 = vmatprep.mubr.bf16.mxu0 %v3771_v19  ;;  %v500_v60 = vshrl.u32 %v3832_v54, 16 }
  0x31   : > { %2989 = vmatprep.subr.bf16.mxu1 %v3465_v62  ;;  %1496 = vmatprep.mubr.bf16.mxu1 %v3787_v25  ;;  %v3489_v62 = vld [vmem:[%s4644_s1 + $0x1c0] sm:$0xff]  }
  0x32   : > { %3100 = vmatpush3.bf16.msra.mxu0 %v3484_v49  ;;  %v505_v7 = vor.u32 %v504_v1, %v500_v60  ;;  %v3503_v49 = vld [vmem:[%s4644_s1 + $0x168] sm:$0xff]  }
  0x33   : > { %3101 = vmatprep.subr.bf16.mxu0 %v3491_v6  ;;  %v3930_v60 = vld [vmem:[%s3645_s16 + $0x68] ss:$0 sps:$4 sm:$0x11]  }
  0x34   : > { %2990 = vmatpush3.bf16.msra.mxu1 %v3467_v10  ;;  %v3864_v10 = vld [vmem:[%s3645_s16 + $0x44] ss:$0 sps:$4 sm:$0x11]   ;;  %v3867_v11 = vsel %vm450_vm0, %v505_v7, %v509_v2  ;;  %v3508_v2 = vld [vmem:[%s4644_s1 + $0x190] sm:$0xff]  }
  0x35   : > { %2991 = vmatprep.subr.bf16.mxu1 %v3473_v16  ;;  %v519_v16 = vshll.u32 %v3864_v10, 16 }
  0x37   : > { %1401 = vmatmul.mubr.bf16.gmra.mrb[8].mxu0 %v3742_v63  ;;  %1497 = vmatmul.mubr.bf16.gmra.mrb[8].mxu1 %v3751_v4  ;;  %v521_v26 = vrot.slane %v519_v16, 1  ;;  %v3958_v16 = vld [vmem:[%s3645_s16 + $0x74] ss:$0 sps:$4 sm:$0x11]  }
  0x38   : > { %2992 = vmatpush3.bf16.msra.mxu1 %v3474_v18  ;;  %1408 = vmatprep.mubr.bf16.mxu0 %v3812_v48  ;;  %v3877_v18 = vld [vmem:[%s3645_s16 + $0x50] ss:$0 sps:$4 sm:$0x11]  }
  0x39   : > { %2993 = vmatprep.subr.bf16.mxu1 %v3475_v21  ;;  %1504 = vmatprep.mubr.bf16.mxu1 %v3820_v51  ;;  %v516_v21 = vrot.slane %v514_v15, 1  ;;  %v531_v29 = vshll.u32 %v3877_v18, 16  ;;  %v3511_v15 = vld [vmem:[%s4644_s1 + $0x170] sm:$0xff]  }
  0x3b   : > { %v517_v32 = vor.u32 %v516_v21, %v512_v14  ;;  %v533_v39 = vrot.slane %v531_v29, 1  ;;  %v3950_v14 = vld [vmem:[%s3645_s16 + $0x6c] sm:$0xff]   ;;  %v3515_v29 = vld [vmem:[%s4644_s1 + $0x1d8] sm:$0xff]  }
  0x3c   : > { %2994 = vmatpush3.bf16.msra.mxu1 %v3476_v28  ;;  %v526_v28 = vshll.u32 %v3873_v17, 16  ;;  %v3512_v21 = vld [vmem:[%s4644_s1 + $0x130] sm:$0xff]  }
  0x3d   : > { %2995 = vmatprep.subr.bf16.mxu1 %v3481_v34  ;;  %v3499_v34 = vld [vmem:[%s4644_s1 + $0x120] sm:$0xff]   ;;  %v3897_v41 = vsel %vm450_vm0, %v517_v32, %v521_v26  ;;  %v3976_v32 = vld [vmem:[%s3645_s16 + $0x78] sm:$0xff]  }
  0x3e   : > { %v528_v33 = vrot.slane %v526_v28, 1  ;;  %v562_v28 = vshll.u32 %v3950_v14, 16 }
  0x3f   : > { %1409 = vmatmul.mubr.bf16.gmra.mrb[12].mxu0 %v3777_v22  ;;  %1505 = vmatmul.mubr.bf16.gmra.mrb[12].mxu1 %v3784_v24 }
  0x40   : > { %2996 = vmatpush3.bf16.msra.mxu1 %v3483_v13  ;;  %1545 = vmatprep.mubr.bf16.mxu1 %v3687_v36  ;;  %v3492_v36 = vld [vmem:[%s4644_s1 + $0x118] sm:$0xff]   ;;  %v529_v44 = vor.u32 %v528_v33, %v524_v27  ;;  %v536_v13 = vshrl.u32 %v3904_v46, 16 }
  0x41   : > { %2997 = vmatprep.subr.bf16.mxu1 %v3485_v53  ;;  %3102 = vmatpush3.bf16.msra.mxu0 %v3492_v36  ;;  %v3504_v53 = vld [vmem:[%s4644_s1 + $0x128] sm:$0xff]   ;;  %v3516_v33 = vld [vmem:[%s4644_s1 + $0x198] sm:$0xff]  }
  0x42   : > { %1416 = vmatprep.mubr.bf16.mxu0 %v3867_v11  ;;  %3103 = vmatprep.subr.bf16.mxu0 %v3497_v20  ;;  %v3914_v50 = vsel %vm450_vm0, %v529_v44, %v533_v39  ;;  %v541_v61 = vor.u32 %v540_v12, %v536_v13  ;;  %v670_v20 = vrot.slane %v3781_v23, 1  ;;  %v560_v23 = vshrl.u32 %v3950_v14, 16  ;;  %v3517_v39 = vld [vmem:[%s4644_s1 + $0x178] sm:$0xff]  }
  0x43   : > { %v564_v44 = vrot.slane %v562_v28, 1  ;;  %v673_v13 = vrot.slane %v3835_v55, 1  ;;  %v574_v12 = vshll.u32 %v3976_v32, 16 }
  0x44   : > { %2998 = vmatpush3.bf16.msra.mxu1 %v3486_v57  ;;  %v3926_v57 = vld [vmem:[%s3645_s16 + $0x60] sm:$0xff]  }
  0x45   : > { %3207 = vmatprep.subr.bf16.mxu1 %v3489_v62  ;;  %3104 = vmatpush3.bf16.msra.mxu0 %v3499_v34  ;;  %v545_v62 = vrot.slane %v543_v52, 1  ;;  %v550_v1 = vshll.u32 %v3926_v57, 16  ;;  %v548_v6 = vshrl.u32 %v3926_v57, 16  ;;  %v567_v34 = vshll.u32 %v3958_v16, 16 }
  0x46   : > { %3105 = vmatprep.subr.bf16.mxu0 %v3503_v49  ;;  %v672_v49 = vrot.slane %v3832_v54, 1  ;;  %v565_v52 = vor.u32 %v564_v44, %v560_v23 }
  0x47   : > { %1546 = vmatmul.mubr.bf16.vlgmr.msra.gmra.mrb[16].mxu1 %v662_v8  ;;  %1417 = vmatmul.mubr.bf16.gmra.mrb[16].mxu0 %v3832_v54  ;;  %v3946_v36 = vsel %vm450_vm0, %v541_v61, %v545_v62  ;;  %v552_v7 = vrot.slane %v550_v1, 1  ;;  %v555_v8 = vshll.u32 %v3930_v60, 16  ;;  %v4007_v61 = vld [vmem:[%s4644_s1 + $0x200] sm:$0xff]   ;;  %v572_v62 = vshrl.u32 %v3976_v32, 16 }
  0x48   : > { %3208 = vmatpush3.bf16.msra.mxu1 %v3490_v3  ;;  %1553 = vmatprep.mubr.bf16.mxu1 %v3742_v63  ;;  %v3942_v3 = vsel %vm659_vm1, %v666_v59, %v667_v45  ;;  %v669_v59 = vrot.slane %v3777_v22, 1  ;;  %v3518_v45 = vld [vmem:[%s4644_s1 + $0x138] sm:$0xff]   ;;  %v4010_v55 = vsel %vm659_vm1, %v672_v49, %v673_v13  ;;  %v3523_v1 = vld [vmem:[%s4644_s1 + $0x1a0] sm:$0xff]  }
  0x49   : > { %3209 = vmatprep.subr.bf16.mxu1 %v3498_v31  ;;  %1424 = vmatprep.mubr.bf16.mxu0 %v3897_v41  ;;  %v553_v26 = vor.u32 %v552_v7, %v548_v6  ;;  %v557_v27 = vrot.slane %v555_v8, 1  ;;  %v4018_v6 = vld [vmem:[%s3645_s16 + $0x84] sm:$0xff]   ;;  %v576_v8 = vrot.slane %v574_v12, 1  ;;  %v3532_v13 = vld [vmem:[%s4644_s1 + $0x1b8] sm:$0xff]  }
  0x4a   : > { %3106 = vmatpush3.bf16.msra.mxu0 %v3504_v53  ;;  %v3972_v31 = vsel %vm659_vm1, %v669_v59, %v670_v20  ;;  %v569_v53 = vrot.slane %v567_v34, 1  ;;  %v675_v59 = vrot.slane %v3861_v9, 1  ;;  %v4030_v20 = vld [vmem:[%s3645_s16 + $0x8c] ss:$0 sps:$4 sm:$0x11]   ;;  %v586_v23 = vshll.u32 %v4018_v6, 16 }
  0x4b   : > { %3107 = vmatprep.subr.bf16.mxu0 %v3511_v15  ;;  %v3524_v15 = vld [vmem:[%s4644_s1 + $0x1e8] sm:$0xff]   ;;  %v577_v28 = vor.u32 %v576_v8, %v572_v62  ;;  %v3530_v34 = vld [vmem:[%s4644_s1 + $0x1f8] sm:$0xff]   ;;  %v591_v44 = vshll.u32 %v4030_v20, 16 }
  0x4c   : > { %3210 = vmatpush3.bf16.msra.mxu1 %v3500_v40  ;;  %v3986_v40 = vsel %vm450_vm0, %v553_v26, %v557_v27  ;;  %v4022_v7 = vsel %vm450_vm0, %v565_v52, %v569_v53  ;;  %v3526_v26 = vld [vmem:[%s4644_s1 + $0x1a8] sm:$0xff]   ;;  %v3527_v27 = vld [vmem:[%s4644_s1 + $0x1f0] sm:$0xff]   ;;  %v588_v49 = vrot.slane %v586_v23, 1  ;;  %v678_v52 = vrot.slane %v3873_v17, 1 }
  0x4d   : > { %3211 = vmatprep.subr.bf16.mxu1 %v3507_v37  ;;  %v3521_v37 = vld [vmem:[%s4644_s1 + $0x1e0] sm:$0xff]   ;;  %v679_v53 = vrot.slane %v3877_v18, 1  ;;  %v682_v18 = vrot.slane %v3908_v47, 1  ;;  %v3525_v47 = vld [vmem:[%s4644_s1 + $0x208] sm:$0xff]  }
  0x4e   : > { %3108 = vmatpush3.bf16.msra.mxu0 %v3512_v21  ;;  %v676_v21 = vrot.slane %v3864_v10, 1  ;;  %v3529_v10 = vld [vmem:[%s4644_s1 + $0x1b0] sm:$0xff]   ;;  %v3535_v23 = vld [vmem:[%s4644_s1 + $0x228] sm:$0xff]  }
  0x4f   : > { %1554 = vmatmul.mubr.bf16.gmra.mrb[20].mxu1 %v3900_v42  ;;  %1425 = vmatmul.mubr.bf16.gmra.mrb[20].mxu0 %v3861_v9  ;;  %v4067_v62 = vsel %vm659_vm1, %v678_v52, %v679_v53 }
  0x50   : > { %1561 = vmatprep.mubr.bf16.mxu1 %v3777_v22  ;;  %1432 = vmatprep.mubr.bf16.mxu0 %v3914_v50 }
  0x51   : > { %3212 = vmatpush3.bf16.msra.mxu1 %v3508_v2  ;;  %3109 = vmatprep.subr.bf16.mxu0 %v3517_v39  ;;  %v579_v2 = vshll.u32 %v3997_v0, 16  ;;  %v584_v39 = vshrl.u32 %v4018_v6, 16 }
  0x52   : > { %3213 = vmatprep.subr.bf16.mxu1 %v3515_v29  ;;  %3110 = vmatpush3.bf16.msra.mxu0 %v3518_v45 }
  0x53   : > { %3343 = vmatprep.subr.bf16.mxu0 %v4007_v61  ;;  %v581_v29 = vrot.slane %v579_v2, 1  ;;  %v589_v12 = vor.u32 %v588_v49, %v584_v39  ;;  %v681_v2 = vrot.slane %v3904_v46, 1  ;;  %v3536_v39 = vld [vmem:[%s4644_s1 + $0x230] sm:$0xff]   ;;  %v3537_v49 = vld [vmem:[%s4644_s1 + $0x238] sm:$0xff]  }
  0x55   : > { %3214 = vmatpush3.bf16.msra.mxu1 %v3516_v33  ;;  %v4047_v33 = vsel %vm659_vm1, %v675_v59, %v676_v21  ;;  %v4055_v45 = vsel %vm450_vm0, %v577_v28, %v581_v29  ;;  %v4079_v8 = vsel %vm659_vm1, %v681_v2, %v682_v18  ;;  %v685_v59 = vrot.slane %v3930_v60, 1  ;;  %v3534_v28 = vld [vmem:[%s4644_s1 + $0x220] sm:$0xff]  }
  0x56   : > { %3215 = vmatprep.subr.bf16.mxu1 %v3521_v37  ;;  %v593_v37 = vrot.slane %v591_v44, 1  ;;  %v702_v18 = vrot.slane %v3751_v4, 1 }
  0x57   : > { %1562 = vmatmul.mubr.bf16.gmra.mrb[24].mxu1 %v3942_v3  ;;  %1433 = vmatmul.mubr.bf16.gmra.mrb[24].mxu0 %v3873_v17 }
  0x58   : > { %1569 = vmatprep.mubr.bf16.mxu1 %v3832_v54  ;;  %1440 = vmatprep.mubr.bf16.mxu0 %v3946_v36 }
  0x59   : > { %3216 = vmatpush3.bf16.msra.mxu1 %v3523_v1  ;;  %v4070_v1 = vsel %vm450_vm0, %v589_v12, %v593_v37  ;;  %v699_v12 = vrot.slane %v3693_v38, 1  ;;  %v700_v37 = vrot.slane %v3703_v43, 1  ;;  %v4170_v43 = vld [vmem:[%s3645_s16 + $0xc0] sm:$0xff]  }
  0x5a   : > { %3217 = vmatprep.subr.bf16.mxu1 %v3524_v15  ;;  %v684_v15 = vrot.slane %v3926_v57, 1 }
  0x5b   : > { %v4158_v2 = vsel %vm659_vm1, %v699_v12, %v700_v37 }
  0x5c   : > { %v4088_v21 = vsel %vm659_vm1, %v684_v15, %v685_v59  ;;  %v703_v15 = vrot.slane %v3754_v5, 1  ;;  %v705_v59 = vrot.slane %v3784_v24, 1  ;;  %v736_v5 = vshll.u32 %v4170_v43, 16 }
  0x5d   : > { %3218 = vmatpush3.bf16.msra.mxu1 %v3526_v26  ;;  %v687_v26 = vrot.slane %v3950_v14, 1 }
  0x5e   : > { %3219 = vmatprep.subr.bf16.mxu1 %v3527_v27  ;;  %v688_v27 = vrot.slane %v3958_v16, 1  ;;  %v690_v16 = vrot.slane %v3976_v32, 1 }
  0x5f   : > { %1570 = vmatmul.mubr.bf16.gmra.mrb[28].mxu1 %v3972_v31  ;;  %1441 = vmatmul.mubr.bf16.gmra.mrb[28].mxu0 %v3904_v46 }
  0x60   : > { %1577 = vmatprep.mubr.bf16.mxu1 %v3861_v9  ;;  %1448 = vmatprep.mubr.bf16.mxu0 %v3986_v40  ;;  %v4104_v60 = vsel %vm659_vm1, %v687_v26, %v688_v27 }
  0x61   : > { %3220 = vmatpush3.bf16.msra.mxu1 %v3529_v10  ;;  %v693_v10 = vrot.slane %v4018_v6, 1 }
  0x62   : > { %3221 = vmatprep.subr.bf16.mxu1 %v3530_v34  ;;  %v694_v34 = vrot.slane %v4030_v20, 1 }
  0x64   : > { %v4137_v44 = vsel %vm659_vm1, %v693_v10, %v694_v34 }
  0x65   : > { %3222 = vmatpush3.bf16.msra.mxu1 %v3532_v13  ;;  %v3542_v13 = vld [vmem:[%s3645_s16 + $0x98] ss:$0 sps:$4 sm:$0x11]  }
  0x66   : > { %v697_v52 = vrot.slane %v3542_v13, 1 }
  0x67   : > { %1578 = vmatmul.mubr.bf16.gmra.mrb[32].mxu1 %v4010_v55  ;;  %1449 = vmatmul.mubr.bf16.gmra.mrb[32].mxu0 %v3926_v57 }
  0x68   : > { %1585 = vmatprep.mubr.bf16.mxu1 %v3873_v17  ;;  %1456 = vmatprep.mubr.bf16.mxu0 %v4022_v7 }
  0x6f   : > { %1586 = vmatmul.mubr.bf16.gmra.mrb[36].mxu1 %v4047_v33  ;;  %1457 = vmatmul.mubr.bf16.gmra.mrb[36].mxu0 %v3950_v14 }
  0x70   : > { %1593 = vmatprep.mubr.bf16.mxu1 %v3904_v46  ;;  %1464 = vmatprep.mubr.bf16.mxu0 %v4055_v45 }
  0x77   : > { %1594 = vmatmul.mubr.bf16.gmra.mrb[40].mxu1 %v4067_v62  ;;  %1465 = vmatmul.mubr.bf16.gmra.mrb[40].mxu0 %v3976_v32 }
  0x78   : > { %1601 = vmatprep.mubr.bf16.mxu1 %v3926_v57  ;;  %1472 = vmatprep.mubr.bf16.mxu0 %v4070_v1 }
  0x7f   : > { %1602 = vmatmul.mubr.bf16.gmra.mrb[44].mxu1 %v4079_v8  ;;  %1473 = vmatmul.mubr.bf16.gmra.mrb[44].mxu0 %v4018_v6 }
  0x80   : > { %1609 = vmatprep.mubr.bf16.mxu1 %v3950_v14  ;;  %1706 = vmatprep.mubr.bf16.mxu0 %v3900_v42  ;;  %v3528_v42 = vld [vmem:[%s4644_s1 + $0x210] sm:$0xff]  }
  0x87   : > { %1610 = vmatmul.mubr.bf16.gmra.mrb[48].mxu1 %v4088_v21  ;;  %1707 = vmatmul.mubr.bf16.vlgmr.msra.gmra.mrb[48].mxu0 %v3719_v56  ;;  %v3531_v56 = vld [vmem:[%s4644_s1 + $0x218] sm:$0xff]  }
  0x88   : > { %1617 = vmatprep.mubr.bf16.mxu1 %v3976_v32  ;;  %3344 = vmatpush3.bf16.msra.mxu0 %v4007_v61  ;;  %v691_v61 = vrot.slane %v3997_v0, 1  ;;  %v4127_v0 = vld [vmem:[%s3645_s16 + $0x90] sm:$0xff]  }
  0x89   : > { %1714 = vmatprep.mubr.bf16.mxu0 %v3942_v3  ;;  %3345 = vmatprep.subr.bf16.mxu0 %v3525_v47  ;;  %v696_v20 = vrot.slane %v4127_v0, 1 }
  0x8a   : > { %v4119_v29 = vsel %vm659_vm1, %v690_v16, %v691_v61 }
  0x8b   : > { %v4149_v53 = vsel %vm659_vm1, %v696_v20, %v697_v52 }
  0x8c   : > { %3346 = vmatpush3.bf16.msra.mxu0 %v3525_v47  ;;  %v706_v47 = vrot.slane %v3797_v30, 1  ;;  %v738_v30 = vrot.slane %v736_v5, 1 }
  0x8d   : > { %3347 = vmatprep.subr.bf16.mxu0 %v3528_v42 }
  0x8f   : > { %1618 = vmatmul.mubr.bf16.gmra.mrb[52].mxu1 %v4104_v60  ;;  %1715 = vmatmul.mubr.bf16.gmra.mrb[52].mxu0 %v3771_v19 }
  0x90   : > { %1625 = vmatprep.mubr.bf16.mxu1 %v4018_v6  ;;  %1722 = vmatprep.mubr.bf16.mxu0 %v3972_v31 }
  0x91   : > { %3348 = vmatpush3.bf16.msra.mxu0 %v3528_v42 }
  0x92   : > { %3349 = vmatprep.subr.bf16.mxu0 %v3531_v56 }
  0x95   : > { %3350 = vmatpush3.bf16.msra.mxu0 %v3531_v56 }
  0x96   : > { %3351 = vmatprep.subr.bf16.mxu0 %v3534_v28 }
  0x97   : > { %1626 = vmatmul.mubr.bf16.gmra.mrb[56].mxu1 %v4119_v29  ;;  %1723 = vmatmul.mubr.bf16.gmra.mrb[56].mxu0 %v3812_v48 }
  0x98   : > { %1633 = vmatprep.mubr.bf16.mxu1 %v4127_v0  ;;  %1730 = vmatprep.mubr.bf16.mxu0 %v4010_v55 }
  0x99   : > { %3352 = vmatpush3.bf16.msra.mxu0 %v3534_v28 }
  0x9a   : > { %3353 = vmatprep.subr.bf16.mxu0 %v3535_v23 }
  0x9d   : > { %3354 = vmatpush3.bf16.msra.mxu0 %v3535_v23 }
  0x9e   : > { %3355 = vmatprep.subr.bf16.mxu0 %v3536_v39 }
  0x9f   : > { %1634 = vmatmul.mubr.bf16.gmra.mrb[60].mxu1 %v4137_v44  ;;  %1731 = vmatmul.mubr.bf16.gmra.mrb[60].mxu0 %v3867_v11 }
  0xa0   : > { %1641 = vmatprep.mubr.bf16.mxu1 %v3693_v38  ;;  %1738 = vmatprep.mubr.bf16.mxu0 %v4047_v33  ;;  %v4167_v38 = vsel %vm659_vm1, %v702_v18, %v703_v15 }
  0xa1   : > { %3356 = vmatpush3.bf16.msra.mxu0 %v3536_v39 }
  0xa2   : > { %3357 = vmatprep.subr.bf16.mxu0 %v3537_v49 }
  0xa5   : > { %3358 = vmatpush3.bf16.msra.mxu0 %v3537_v49 }
  0xa7   : > { %1642 = vmatmul.mubr.bf16.gmra.mrb[64].mxu1 %v4149_v53  ;;  %1739 = vmatmul.mubr.bf16.gmra.mrb[64].mxu0 %v3897_v41 }
  0xa8   : > { %1649 = vmatprep.mubr.bf16.mxu1 %v3751_v4  ;;  %1746 = vmatprep.mubr.bf16.mxu0 %v4067_v62  ;;  %v4179_v4 = vsel %vm659_vm1, %v705_v59, %v706_v47 }
  0xaf   : > { %1650 = vmatmul.mubr.bf16.gmra.mrb[68].mxu1 %v4158_v2  ;;  %1747 = vmatmul.mubr.bf16.gmra.mrb[68].mxu0 %v3914_v50 }
  0xb0   : > { %1657 = vmatprep.mubr.bf16.mxu1 %v3784_v24  ;;  %1754 = vmatprep.mubr.bf16.mxu0 %v4079_v8  ;;  %v734_v24 = vshrl.u32 %v4170_v43, 16 }
  0xb7   : > { %1658 = vmatmul.mubr.bf16.gmra.mrb[72].mxu1 %v4167_v38  ;;  %1755 = vmatmul.mubr.bf16.gmra.mrb[72].mxu0 %v3946_v36 }
  0xb8   : > { %1665 = vmatprep.mubr.bf16.mxu1 %v4170_v43  ;;  %1762 = vmatprep.mubr.bf16.mxu0 %v4088_v21 }
  0xbf   : > { %1666 = vmatmul.mubr.bf16.gmra.mrb[76].mxu1 %v4179_v4  ;;  %1763 = vmatmul.mubr.bf16.gmra.mrb[76].mxu0 %v3986_v40 }
  0xc0   : > { %1867 = vmatprep.mubr.bf16.mxu1 %v3771_v19  ;;  %1770 = vmatprep.mubr.bf16.mxu0 %v4104_v60  ;;  %v746_v19 = vrot.slane %v4170_v43, 1 }
  0xc7   : > { %1868 = vmatmul.mubr.bf16.vlgmr.msra.gmra.mrb[80].mxu1 %v3742_v63  ;;  %1771 = vmatmul.mubr.bf16.gmra.mrb[80].mxu0 %v4022_v7  ;;  %v3538_v63 = vld [vmem:[%s3645_s16 + $0xc8] ss:$0 sps:$4 sm:$0x11]  }
  0xc8   : > { %1875 = vmatprep.mubr.bf16.mxu1 %v3812_v48  ;;  %1778 = vmatprep.mubr.bf16.mxu0 %v4119_v29  ;;  %v741_v48 = vshll.u32 %v3538_v63, 16 }
  0xcf   : > { %1876 = vmatmul.mubr.bf16.gmra.mrb[84].mxu1 %v3777_v22  ;;  %1779 = vmatmul.mubr.bf16.gmra.mrb[84].mxu0 %v4055_v45  ;;  %v747_v22 = vrot.slane %v3538_v63, 1 }
  0xd0   : > { %1883 = vmatprep.mubr.bf16.mxu1 %v3867_v11  ;;  %1786 = vmatprep.mubr.bf16.mxu0 %v4137_v44  ;;  %v743_v11 = vrot.slane %v741_v48, 1 }
  0xd7   : > { %1884 = vmatmul.mubr.bf16.gmra.mrb[88].mxu1 %v3832_v54  ;;  %1787 = vmatmul.mubr.bf16.gmra.mrb[88].mxu0 %v4070_v1  ;;  %v4214_v54 = vsel %vm659_vm1, %v746_v19, %v747_v22 }
  0xd8   : > { %1891 = vmatprep.mubr.bf16.mxu1 %v3897_v41  ;;  %1794 = vmatprep.mubr.bf16.mxu0 %v4149_v53 }
  0xdf   : > { %1892 = vmatmul.mubr.bf16.gmra.mrb[92].mxu1 %v3861_v9  ;;  %1795 = vmatmul.mubr.bf16.gmra.mrb[92].mxu0 %v3684_v35  ;;  %v739_v9 = vor.u32 %v738_v30, %v734_v24 }
  0xe0   : > { %1899 = vmatprep.mubr.bf16.mxu1 %v3914_v50  ;;  %1802 = vmatprep.mubr.bf16.mxu0 %v4158_v2 }
  0xe1   : > { %v4225_v56 = vsel %vm450_vm0, %v739_v9, %v743_v11 }
  0xe7   : > { %1900 = vmatmul.mubr.bf16.gmra.mrb[96].mxu1 %v3873_v17  ;;  %1803 = vmatmul.mubr.bf16.gmra.mrb[96].mxu0 %v3726_v58 }
  0xe8   : > { %1907 = vmatprep.mubr.bf16.mxu1 %v3946_v36  ;;  %1810 = vmatprep.mubr.bf16.mxu0 %v4167_v38 }
  0xef   : > { %1908 = vmatmul.mubr.bf16.gmra.mrb[100].mxu1 %v3904_v46  ;;  %1811 = vmatmul.mubr.bf16.gmra.mrb[100].mxu0 %v3787_v25 }
  0xf0   : > { %1915 = vmatprep.mubr.bf16.mxu1 %v3986_v40  ;;  %1818 = vmatprep.mubr.bf16.mxu0 %v4179_v4 }
  0xf7   : > { %1916 = vmatmul.mubr.bf16.gmra.mrb[104].mxu1 %v3926_v57  ;;  %1819 = vmatmul.mubr.bf16.gmra.mrb[104].mxu0 %v3820_v51 }
  0xf8   : > { %1923 = vmatprep.mubr.bf16.mxu1 %v4022_v7  ;;  %1826 = vmatprep.mubr.bf16.mxu0 %v4214_v54 }
  0xfa   : > { %v2887_v17 = vpop.f32.mrb[0].mxu0  ;;  %v2959_v41 = vpop.f32.mrb[0].mxu1 }
  0xfb   : > { %v2888_v46 = vpop.f32.mrb[1].mxu0  ;;  %v2960_v50 = vpop.f32.mrb[1].mxu1 }
  0xfc   : > { %v4220_v36 = vadd.f32 %v2888_v46, %v2887_v17  ;;  %v4222_v40 = vadd.f32 %v2960_v50, %v2959_v41  ;;  %v2890_v26 = vpop.f32.mrb[2].mxu0  ;;  %v2962_v27 = vpop.f32.mrb[2].mxu1 }
  0xfd   : > { %v2891_v42 = vpop.f32.mrb[3].mxu0  ;;  %v2963_v57 = vpop.f32.mrb[3].mxu1 }
  0xfe   : > { %v4227_v7 = vadd.f32 %v2891_v42, %v2890_v26  ;;  %v4229_v16 = vadd.f32 %v2963_v57, %v2962_v27 }
  0xff   : > { %1924 = vmatmul.mubr.bf16.gmra.mrb[108].mxu1 %v3950_v14  ;;  %1827 = vmatmul.mubr.bf16.gmra.mrb[108].mxu0 %v4225_v56 }
 0x100   : > { %1931 = vmatprep.mubr.bf16.mxu1 %v4055_v45  ;;  %3359 = vmatprep.mubr.bf16.mxu0 %v3942_v3 }
 0x102   : > { %v2893_v61 = vpop.f32.mrb[4].mxu0  ;;  %v2965_v28 = vpop.f32.mrb[4].mxu1 }
 0x103   : > { %v2894_v23 = vpop.f32.mrb[5].mxu0  ;;  %v2966_v10 = vpop.f32.mrb[5].mxu1 }
 0x104   : > { %v4235_v34 = vadd.f32 %v2894_v23, %v2893_v61  ;;  %v4237_v39 = vadd.f32 %v2966_v10, %v2965_v28  ;;  %v2896_v49 = vpop.f32.mrb[6].mxu0  ;;  %v2968_v20 = vpop.f32.mrb[6].mxu1 }
 0x105   : > { %v2897_v13 = vpop.f32.mrb[7].mxu0  ;;  %v2969_v52 = vpop.f32.mrb[7].mxu1 }
 0x106   : > { %v4239_v12 = vadd.f32 %v2897_v13, %v2896_v49  ;;  %v4241_v14 = vadd.f32 %v2969_v52, %v2968_v20 }
 0x107   : > { %1932 = vmatmul.mubr.bf16.gmra.mrb[112].mxu1 %v3976_v32  ;;  %3360 = vmatmul.mubr.bf16.vlgmr.msra.gmra.mrb[112].mxu0 %v3972_v31 }
 0x108   : > { %1939 = vmatprep.mubr.bf16.mxu1 %v4070_v1  ;;  %3363 = vmatprep.mubr.bf16.mxu0 %v4010_v55 }
 0x10a   : > { %v2899_v3 = vpop.f32.mrb[8].mxu0  ;;  %v2971_v45 = vpop.f32.mrb[8].mxu1 }
 0x10b   : > { %v2900_v37 = vpop.f32.mrb[9].mxu0  ;;  %v2972_v18 = vpop.f32.mrb[9].mxu1 }
 0x10c   : > { %v4247_v15 = vadd.f32 %v2900_v37, %v2899_v3  ;;  %v4249_v59 = vadd.f32 %v2972_v18, %v2971_v45  ;;  %v2902_v47 = vpop.f32.mrb[10].mxu0  ;;  %v2974_v63 = vpop.f32.mrb[10].mxu1 }
 0x10d   : > { %v2903_v5 = vpop.f32.mrb[11].mxu0  ;;  %v2975_v19 = vpop.f32.mrb[11].mxu1 }
 0x10e   : > { %v4251_v22 = vadd.f32 %v2903_v5, %v2902_v47  ;;  %v4253_v32 = vadd.f32 %v2975_v19, %v2974_v63  ;;  %v3540_v5 = vld [vmem:[%s3645_s16 + $0xd4] ss:$0 sps:$4 sm:$0x11]  }
 0x10f   : > { %1940 = vmatmul.mubr.bf16.gmra.mrb[116].mxu1 %v4018_v6  ;;  %3364 = vmatmul.mubr.bf16.gmra.mrb[116].mxu0 %v4047_v33 }
 0x110   : > { %1947 = vmatprep.mubr.bf16.mxu1 %v3684_v35  ;;  %3367 = vmatprep.mubr.bf16.mxu0 %v4067_v62 }
 0x112   : > { %v2905_v31 = vpop.f32.mrb[12].mxu0  ;;  %v2977_v55 = vpop.f32.mrb[12].mxu1 }
 0x113   : > { %v2906_v1 = vpop.f32.mrb[13].mxu0  ;;  %v2978_v24 = vpop.f32.mrb[13].mxu1 }
 0x114   : > { %v4259_v30 = vadd.f32 %v2906_v1, %v2905_v31  ;;  %v4261_v48 = vadd.f32 %v2978_v24, %v2977_v55  ;;  %v2908_v9 = vpop.f32.mrb[14].mxu0  ;;  %v2980_v11 = vpop.f32.mrb[14].mxu1 }
 0x115   : > { %v2909_v17 = vpop.f32.mrb[15].mxu0  ;;  %v2981_v41 = vpop.f32.mrb[15].mxu1 }
 0x116   : > { %v4263_v46 = vadd.f32 %v2909_v17, %v2908_v9  ;;  %v4265_v6 = vadd.f32 %v2981_v41, %v2980_v11 }
 0x117   : > { %1948 = vmatmul.mubr.bf16.gmra.mrb[120].mxu1 %v4127_v0  ;;  %3368 = vmatmul.mubr.bf16.gmra.mrb[120].mxu0 %v4079_v8 }
 0x118   : > { %1955 = vmatprep.mubr.bf16.mxu1 %v3726_v58  ;;  %3371 = vmatprep.mubr.bf16.mxu0 %v4088_v21  ;;  %v3543_v58 = vld [vmem:[%s3645_s16 + $0x9c] sm:$0xff]  }
 0x11a   : > { %v2999_v35 = vpop.f32.mrb[16].mxu1  ;;  %v2911_v33 = vpop.f32.mrb[16].mxu0 }
 0x11b   : > { %v3000_v62 = vpop.f32.mrb[17].mxu1  ;;  %v2912_v50 = vpop.f32.mrb[17].mxu0 }
 0x11c   : > { %v3001_v26 = vadd.f32 %v3000_v62, %v2999_v35  ;;  %v3002_v27 = vpop.f32.mrb[18].mxu1  ;;  %v4271_v42 = vadd.f32 %v2912_v50, %v2911_v33  ;;  %v2914_v57 = vpop.f32.mrb[18].mxu0  ;;  %v3545_v50 = vld [vmem:[%s3645_s16 + $0xb4] sm:$0xff]  }
 0x11d   : > { %v3003_v61 = vpop.f32.mrb[19].mxu1  ;;  %v2915_v0 = vpop.f32.mrb[19].mxu0 }
 0x11e   : > { %v4274_v28 = vadd.f32 %v3001_v26, %v4220_v36  ;;  %v3004_v8 = vadd.f32 %v3003_v61, %v3002_v27  ;;  %v4276_v23 = vadd.f32 %v2915_v0, %v2914_v57 }
 0x11f   : > { %1956 = vmatmul.mubr.bf16.gmra.mrb[124].mxu1 %v3543_v58  ;;  %3372 = vmatmul.mubr.bf16.gmra.mrb[124].mxu0 %v4104_v60 }
 0x120   : > { %v4280_v21 = vadd.f32 %v3004_v8, %v4227_v7  ;;  %1963 = vmatprep.mubr.bf16.mxu1 %v3787_v25  ;;  %3375 = vmatprep.mubr.bf16.mxu0 %v4119_v29  ;;  %v4288_v7 = vld [vmem:[%s3645_s16 + $0xcc] sm:$0xff]  }
 0x121   : > { %v3544_v29 = vld [vmem:[%s3645_s16 + $0xa8] sm:$0xff]   ;;  %v762_v19 = vshll.u32 %v4288_v7, 16  ;;  %s2600_s16 = sshll.u32 %s4652_s12, 1 }
 0x122   : > { %v3005_v10 = vpop.f32.mrb[20].mxu1  ;;  %v2917_v36 = vpop.f32.mrb[20].mxu0  ;;  %s4467_s6 = scalar_lea.vmem %s4646_s3, %s2600_s16 }
 0x123   : > { %v3006_v49 = vpop.f32.mrb[21].mxu1  ;;  %v2918_v20 = vpop.f32.mrb[21].mxu0  ;;  %v764_v41 = vrot.slane %v762_v19, 1 }
 0x124   : > { %v3007_v13 = vadd.f32 %v3006_v49, %v3005_v10  ;;  %v3008_v52 = vpop.f32.mrb[22].mxu1  ;;  %v4285_v3 = vadd.f32 %v2918_v20, %v2917_v36  ;;  %v2920_v45 = vpop.f32.mrb[22].mxu0 }
 0x125   : > { %v3009_v37 = vpop.f32.mrb[23].mxu1  ;;  %v2921_v25 = vpop.f32.mrb[23].mxu0 }
 0x126   : > { %v4291_v60 = vadd.f32 %v3007_v13, %v4235_v34  ;;  %v3010_v18 = vadd.f32 %v3009_v37, %v3008_v52  ;;  %v4293_v47 = vadd.f32 %v2921_v25, %v2920_v45  ;;  %v772_v45 = vrot.slane %v4288_v7, 1 }
 0x127   : > { %1964 = vmatmul.mubr.bf16.gmra.mrb[128].mxu1 %v3544_v29  ;;  %3376 = vmatmul.mubr.bf16.gmra.mrb[128].mxu0 %v4137_v44  ;;  %v760_v44 = vshrl.u32 %v4288_v7, 16  ;;  %v773_v37 = vrot.slane %v3540_v5, 1 }
 0x128   : > { %v4297_v63 = vadd.f32 %v3010_v18, %v4239_v12  ;;  %1971 = vmatprep.mubr.bf16.mxu1 %v3820_v51  ;;  %3379 = vmatprep.mubr.bf16.mxu0 %v4149_v53  ;;  %v767_v51 = vshll.u32 %v3540_v5, 16 }
 0x129   : > { %v765_v27 = vor.u32 %v764_v41, %v760_v44 }
 0x12a   : > { %v3011_v34 = vpop.f32.mrb[24].mxu1  ;;  %v2923_v31 = vpop.f32.mrb[24].mxu0  ;;  %v769_v57 = vrot.slane %v767_v51, 1 }
 0x12b   : > { %v3012_v55 = vpop.f32.mrb[25].mxu1  ;;  %v2924_v1 = vpop.f32.mrb[25].mxu0 }
 0x12c   : > { %v3013_v24 = vadd.f32 %v3012_v55, %v3011_v34  ;;  %v3014_v9 = vpop.f32.mrb[26].mxu1  ;;  %v4304_v11 = vadd.f32 %v2924_v1, %v2923_v31  ;;  %v2926_v12 = vpop.f32.mrb[26].mxu0 }
 0x12d   : > { %v3015_v17 = vpop.f32.mrb[27].mxu1  ;;  %v2927_v35 = vpop.f32.mrb[27].mxu0 }
 0x12e   : > { %v4308_v53 = vadd.f32 %v3013_v24, %v4247_v15  ;;  %v3016_v33 = vadd.f32 %v3015_v17, %v3014_v9  ;;  %v4310_v62 = vadd.f32 %v2927_v35, %v2926_v12 }
 0x12f   : > { %1972 = vmatmul.mubr.bf16.gmra.mrb[132].mxu1 %v3545_v50  ;;  %3380 = vmatmul.mubr.bf16.gmra.mrb[132].mxu0 %v4158_v2 }
 0x130   : > { %v4314_v26 = vadd.f32 %v3016_v33, %v4251_v22  ;;  %1979 = vmatprep.mubr.bf16.mxu1 %v4225_v56  ;;  %3383 = vmatprep.mubr.bf16.mxu0 %v4167_v38  ;;  %v770_v22 = vsel %vm450_vm0, %v765_v27, %v769_v57 }
 0x132   : > { %v3017_v61 = vpop.f32.mrb[28].mxu1  ;;  %v2929_v15 = vpop.f32.mrb[28].mxu0 }
 0x133   : > { %v3018_v0 = vpop.f32.mrb[29].mxu1  ;;  %v2930_v8 = vpop.f32.mrb[29].mxu0 }
 0x134   : > { %v3019_v58 = vadd.f32 %v3018_v0, %v3017_v61  ;;  %v3020_v10 = vpop.f32.mrb[30].mxu1  ;;  %v4319_v36 = vadd.f32 %v2930_v8, %v2929_v15  ;;  %v2932_v49 = vpop.f32.mrb[30].mxu0 }
 0x135   : > { %v3021_v20 = vpop.f32.mrb[31].mxu1  ;;  %v2933_v56 = vpop.f32.mrb[31].mxu0 }
 0x136   : > { %v4323_v2 = vadd.f32 %v3019_v58, %v4259_v30  ;;  %v3022_v13 = vadd.f32 %v3021_v20, %v3020_v10  ;;  %v4325_v38 = vadd.f32 %v2933_v56, %v2932_v49 }
 0x137   : > { %1980 = vmatmul.mubr.bf16.gmra.mrb[136].mxu1 %v4170_v43  ;;  %3384 = vmatmul.mubr.bf16.gmra.mrb[136].mxu0 %v4179_v4 }
 0x138   : > { %v4329_v52 = vadd.f32 %v3022_v13, %v4263_v46  ;;  %1987 = vmatprep.mubr.bf16.mxu1 %v770_v22  ;;  %3387 = vmatprep.mubr.bf16.mxu0 %v4214_v54  ;;  %v774_v46 = vsel %vm659_vm1, %v772_v45, %v773_v37 }
 0x13a   : > { %v3023_v25 = vpop.f32.mrb[32].mxu1  ;;  %v2935_v30 = vpop.f32.mrb[32].mxu0 }
 0x13b   : > { %v3024_v18 = vpop.f32.mrb[33].mxu1  ;;  %v2936_v29 = vpop.f32.mrb[33].mxu0 }
 0x13c   : > { %v3025_v19 = vadd.f32 %v3024_v18, %v3023_v25  ;;  %v3026_v34 = vpop.f32.mrb[34].mxu1  ;;  %v2937_v31 = vadd.f32 %v2936_v29, %v2935_v30  ;;  %v2938_v55 = vpop.f32.mrb[34].mxu0 }
 0x13d   : > { %v3027_v43 = vpop.f32.mrb[35].mxu1  ;;  %v2939_v4 = vpop.f32.mrb[35].mxu0 }
 0x13e   : > { %v4336_v1 = vadd.f32 %v3025_v19, %v4271_v42  ;;  %v3028_v24 = vadd.f32 %v3027_v43, %v3026_v34  ;;  %v2940_v54 = vadd.f32 %v2939_v4, %v2938_v55 }
 0x13f   : > { %1988 = vmatmul.mubr.bf16.gmra.mrb[140].mxu1 %v4288_v7  ;;  %3388 = vmatmul.mubr.bf16.gmra.mrb[140].mxu0 %v774_v46 }
 0x140   : > { %v4340_v5 = vadd.f32 %v3028_v24, %v4276_v23 }
 0x142   : > { %v3029_v9 = vpop.f32.mrb[36].mxu1  ;;  %v2941_v12 = vpop.f32.mrb[36].mxu0 }
 0x143   : > { %v3030_v17 = vpop.f32.mrb[37].mxu1  ;;  %v2942_v44 = vpop.f32.mrb[37].mxu0 }
 0x144   : > { %v3031_v41 = vadd.f32 %v3030_v17, %v3029_v9  ;;  %v3032_v51 = vpop.f32.mrb[38].mxu1  ;;  %v2943_v35 = vadd.f32 %v2942_v44, %v2941_v12  ;;  %v2944_v33 = vpop.f32.mrb[38].mxu0 }
 0x145   : > { %v3033_v50 = vpop.f32.mrb[39].mxu1  ;;  %v2945_v27 = vpop.f32.mrb[39].mxu0 }
 0x146   : > { %v4343_v42 = vadd.f32 %v3031_v41, %v4285_v3  ;;  %v3034_v57 = vadd.f32 %v3033_v50, %v3032_v51  ;;  %v2946_v61 = vadd.f32 %v2945_v27, %v2944_v33 }
 0x148   : > { %v4346_v7 = vadd.f32 %v3034_v57, %v4293_v47 }
 0x14a   : > { %v3035_v23 = vpop.f32.mrb[40].mxu1  ;;  %v2947_v15 = vpop.f32.mrb[40].mxu0 }
 0x14b   : > { %v3036_v0 = vpop.f32.mrb[41].mxu1  ;;  %v2948_v8 = vpop.f32.mrb[41].mxu0 }
 0x14c   : > { %v3037_v58 = vadd.f32 %v3036_v0, %v3035_v23  ;;  %v3038_v10 = vpop.f32.mrb[42].mxu1  ;;  %v4348_v49 = vadd.f32 %v2948_v8, %v2947_v15  ;;  %v2950_v20 = vpop.f32.mrb[42].mxu0 }
 0x14d   : > { %v3039_v22 = vpop.f32.mrb[43].mxu1  ;;  %v2951_v3 = vpop.f32.mrb[43].mxu0 }
 0x14e   : > { %v4351_v56 = vadd.f32 %v3037_v58, %v4304_v11  ;;  %v3040_v13 = vadd.f32 %v3039_v22, %v3038_v10  ;;  %v2952_v45 = vadd.f32 %v2951_v3, %v2950_v20 }
 0x150   : > { %v4354_v37 = vadd.f32 %v3040_v13, %v4310_v62 }
 0x152   : > { %v3041_v47 = vpop.f32.mrb[44].mxu1  ;;  %v2953_v25 = vpop.f32.mrb[44].mxu0 }
 0x153   : > { %v3042_v30 = vpop.f32.mrb[45].mxu1  ;;  %v2954_v18 = vpop.f32.mrb[45].mxu0 }
 0x154   : > { %v3043_v29 = vadd.f32 %v3042_v30, %v3041_v47  ;;  %v3044_v19 = vpop.f32.mrb[46].mxu1  ;;  %v4356_v34 = vadd.f32 %v2954_v18, %v2953_v25  ;;  %v2956_v55 = vpop.f32.mrb[46].mxu0 }
 0x155   : > { %v3045_v43 = vpop.f32.mrb[47].mxu1  ;;  %v2957_v11 = vpop.f32.mrb[47].mxu0 }
 0x156   : > { %v4359_v46 = vadd.f32 %v3043_v29, %v4319_v36  ;;  %v3046_v4 = vadd.f32 %v3045_v43, %v3044_v19  ;;  %v4361_v24 = vadd.f32 %v2957_v11, %v2956_v55 }
 0x158   : > { %v4364_v62 = vadd.f32 %v3046_v4, %v4325_v38 }
 0x15a   : > { %v3047_v9 = vpop.f32.mrb[48].mxu1  ;;  %v3111_v12 = vpop.f32.mrb[48].mxu0 }
 0x15b   : > { %v3048_v17 = vpop.f32.mrb[49].mxu1  ;;  %v3112_v41 = vpop.f32.mrb[49].mxu0 }
 0x15c   : > { %v3049_v44 = vadd.f32 %v3048_v17, %v3047_v9  ;;  %v3050_v51 = vpop.f32.mrb[50].mxu1  ;;  %v3113_v33 = vadd.f32 %v3112_v41, %v3111_v12  ;;  %v3114_v50 = vpop.f32.mrb[50].mxu0 }
 0x15d   : > { %v3051_v27 = vpop.f32.mrb[51].mxu1  ;;  %v3115_v23 = vpop.f32.mrb[51].mxu0 }
 0x15e   : > { %v4366_v57 = vadd.f32 %v3049_v44, %v2937_v31  ;;  %v3052_v36 = vadd.f32 %v3051_v27, %v3050_v51  ;;  %v4369_v15 = vadd.f32 %v3113_v33, %v4274_v28  ;;  %v3116_v0 = vadd.f32 %v3115_v23, %v3114_v50 }
 0x160   : > { %v4371_v8 = vadd.f32 %v3052_v36, %v2940_v54  ;;  %v4374_v38 = vadd.f32 %v3116_v0, %v4280_v21 }
 0x162   : > { %v3053_v58 = vpop.f32.mrb[52].mxu1  ;;  %v3117_v10 = vpop.f32.mrb[52].mxu0 }
 0x163   : > { %v3054_v20 = vpop.f32.mrb[53].mxu1  ;;  %v3118_v3 = vpop.f32.mrb[53].mxu0 }
 0x164   : > { %v3055_v22 = vadd.f32 %v3054_v20, %v3053_v58  ;;  %v3056_v13 = vpop.f32.mrb[54].mxu1  ;;  %v3119_v47 = vadd.f32 %v3118_v3, %v3117_v10  ;;  %v3120_v31 = vpop.f32.mrb[54].mxu0 }
 0x165   : > { %v3057_v25 = vpop.f32.mrb[55].mxu1  ;;  %v3121_v28 = vpop.f32.mrb[55].mxu0 }
 0x166   : > { %v4376_v30 = vadd.f32 %v3055_v22, %v2943_v35  ;;  %v3058_v18 = vadd.f32 %v3057_v25, %v3056_v13  ;;  %v4379_v29 = vadd.f32 %v3119_v47, %v4291_v60  ;;  %v3122_v54 = vadd.f32 %v3121_v28, %v3120_v31 }
 0x168   : > { %v4381_v19 = vadd.f32 %v3058_v18, %v2946_v61  ;;  %v4384_v21 = vadd.f32 %v3122_v54, %v4297_v63 }
 0x16a   : > { %v3059_v55 = vpop.f32.mrb[56].mxu1  ;;  %v3123_v43 = vpop.f32.mrb[56].mxu0 }
 0x16b   : > { %v3060_v11 = vpop.f32.mrb[57].mxu1  ;;  %v3124_v9 = vpop.f32.mrb[57].mxu0 }
 0x16c   : > { %v3061_v4 = vadd.f32 %v3060_v11, %v3059_v55  ;;  %v3062_v12 = vpop.f32.mrb[58].mxu1  ;;  %v3125_v17 = vadd.f32 %v3124_v9, %v3123_v43  ;;  %v3126_v35 = vpop.f32.mrb[58].mxu0 }
 0x16d   : > { %v3063_v44 = vpop.f32.mrb[59].mxu1  ;;  %v3127_v51 = vpop.f32.mrb[59].mxu0 }
 0x16e   : > { %v4387_v41 = vadd.f32 %v3061_v4, %v4348_v49  ;;  %v3064_v60 = vadd.f32 %v3063_v44, %v3062_v12  ;;  %v4390_v61 = vadd.f32 %v3125_v17, %v4308_v53  ;;  %v3128_v33 = vadd.f32 %v3127_v51, %v3126_v35 }
 0x170   : > { %v4392_v63 = vadd.f32 %v3064_v60, %v2952_v45  ;;  %v4395_v50 = vadd.f32 %v3128_v33, %v4314_v26 }
 0x172   : > { %v3065_v27 = vpop.f32.mrb[60].mxu1  ;;  %v3129_v36 = vpop.f32.mrb[60].mxu0 }
 0x173   : > { %v3066_v23 = vpop.f32.mrb[61].mxu1  ;;  %v3130_v58 = vpop.f32.mrb[61].mxu0 }
 0x174   : > { %v3067_v0 = vadd.f32 %v3066_v23, %v3065_v27  ;;  %v3068_v10 = vpop.f32.mrb[62].mxu1  ;;  %v3131_v20 = vadd.f32 %v3130_v58, %v3129_v36  ;;  %v3132_v49 = vpop.f32.mrb[62].mxu0 }
 0x175   : > { %v3069_v22 = vpop.f32.mrb[63].mxu1  ;;  %v3133_v13 = vpop.f32.mrb[63].mxu0 }
 0x176   : > { %v4398_v3 = vadd.f32 %v3067_v0, %v4356_v34  ;;  %v3070_v53 = vadd.f32 %v3069_v22, %v3068_v10  ;;  %v4401_v45 = vadd.f32 %v3131_v20, %v4323_v2  ;;  %v3134_v47 = vadd.f32 %v3133_v13, %v3132_v49 }
 0x178   : > { %v4404_v26 = vadd.f32 %v3070_v53, %v4361_v24  ;;  %v4407_v31 = vadd.f32 %v3134_v47, %v4329_v52 }
 0x17a   : > { %v3071_v25 = vpop.f32.mrb[64].mxu1  ;;  %v3135_v18 = vpop.f32.mrb[64].mxu0 }
 0x17b   : > { %v3072_v28 = vpop.f32.mrb[65].mxu1  ;;  %v3136_v55 = vpop.f32.mrb[65].mxu0 }
 0x17c   : > { %v3073_v54 = vadd.f32 %v3072_v28, %v3071_v25  ;;  %v3074_v43 = vpop.f32.mrb[66].mxu1  ;;  %v3137_v34 = vadd.f32 %v3136_v55, %v3135_v18  ;;  %v3138_v11 = vpop.f32.mrb[66].mxu0 }
 0x17d   : > { %v3075_v4 = vpop.f32.mrb[67].mxu1  ;;  %v3139_v12 = vpop.f32.mrb[67].mxu0 }
 0x17e   : > { %v4410_v9 = vadd.f32 %v3073_v54, %v4222_v40  ;;  %v3076_v2 = vadd.f32 %v3075_v4, %v3074_v43  ;;  %v4413_v24 = vadd.f32 %v3137_v34, %v4336_v1  ;;  %v3140_v17 = vadd.f32 %v3139_v12, %v3138_v11 }
 0x180   : > { %v4416_v52 = vadd.f32 %v3076_v2, %v4229_v16  ;;  %v4419_v35 = vadd.f32 %v3140_v17, %v4340_v5 }
 0x182   : > { %v3077_v44 = vpop.f32.mrb[68].mxu1  ;;  %v3141_v60 = vpop.f32.mrb[68].mxu0 }
 0x183   : > { %v3078_v51 = vpop.f32.mrb[69].mxu1  ;;  %v3142_v27 = vpop.f32.mrb[69].mxu0 }
 0x184   : > { %v3079_v33 = vadd.f32 %v3078_v51, %v3077_v44  ;;  %v3080_v36 = vpop.f32.mrb[70].mxu1  ;;  %v3143_v40 = vadd.f32 %v3142_v27, %v3141_v60  ;;  %v3144_v23 = vpop.f32.mrb[70].mxu0 }
 0x185   : > { %v3081_v0 = vpop.f32.mrb[71].mxu1  ;;  %v3145_v10 = vpop.f32.mrb[71].mxu0 }
 0x186   : > { %v4422_v58 = vadd.f32 %v3079_v33, %v4237_v39  ;;  %v3082_v1 = vadd.f32 %v3081_v0, %v3080_v36  ;;  %v4425_v16 = vadd.f32 %v3143_v40, %v4343_v42  ;;  %v3146_v20 = vadd.f32 %v3145_v10, %v3144_v23 }
 0x188   : > { %v4428_v5 = vadd.f32 %v3082_v1, %v4241_v14  ;;  %v4431_v49 = vadd.f32 %v3146_v20, %v4346_v7 }
 0x18a   : > { %v3083_v22 = vpop.f32.mrb[72].mxu1  ;;  %v3147_v53 = vpop.f32.mrb[72].mxu0 }
 0x18b   : > { %v3084_v13 = vpop.f32.mrb[73].mxu1  ;;  %v3148_v25 = vpop.f32.mrb[73].mxu0 }
 0x18c   : > { %v3085_v47 = vadd.f32 %v3084_v13, %v3083_v22  ;;  %v3086_v18 = vpop.f32.mrb[74].mxu1  ;;  %v3149_v39 = vadd.f32 %v3148_v25, %v3147_v53  ;;  %v3150_v28 = vpop.f32.mrb[74].mxu0 }
 0x18d   : > { %v3087_v54 = vpop.f32.mrb[75].mxu1  ;;  %v3151_v43 = vpop.f32.mrb[75].mxu0 }
 0x18e   : > { %v4434_v55 = vadd.f32 %v3085_v47, %v4249_v59  ;;  %v3088_v42 = vadd.f32 %v3087_v54, %v3086_v18  ;;  %v4437_v14 = vadd.f32 %v3149_v39, %v4351_v56  ;;  %v3152_v34 = vadd.f32 %v3151_v43, %v3150_v28 }
 0x18f   : > { %v3570_v28 = vmov 0.0  }
 0x190   : > { %v4440_v7 = vadd.f32 %v3088_v42, %v4253_v32  ;;  %v4443_v11 = vadd.f32 %v3152_v34, %v4354_v37  ;;  %2321 = vst [vmem:[%s4467_s6] sm:$0x3] %v3570_v28 }
 0x192   : > { %v3089_v4 = vpop.f32.mrb[76].mxu1  ;;  %v3153_v2 = vpop.f32.mrb[76].mxu0 }
 0x193   : > { %v3090_v12 = vpop.f32.mrb[77].mxu1  ;;  %v3154_v44 = vpop.f32.mrb[77].mxu0 }
 0x194   : > { %v3091_v17 = vadd.f32 %v3090_v12, %v3089_v4  ;;  %v3092_v60 = vpop.f32.mrb[78].mxu1  ;;  %v3155_v59 = vadd.f32 %v3154_v44, %v3153_v2  ;;  %v3156_v51 = vpop.f32.mrb[78].mxu0 }
 0x195   : > { %v3093_v33 = vpop.f32.mrb[79].mxu1  ;;  %v3157_v36 = vpop.f32.mrb[79].mxu0 }
 0x196   : > { %v4446_v27 = vadd.f32 %v3091_v17, %v4261_v48  ;;  %v3094_v56 = vadd.f32 %v3093_v33, %v3092_v60  ;;  %v4449_v32 = vadd.f32 %v3155_v59, %v4359_v46  ;;  %v3158_v37 = vadd.f32 %v3157_v36, %v3156_v51 }
 0x198   : > { %v4452_v40 = vadd.f32 %v3094_v56, %v4265_v6  ;;  %v4455_v23 = vadd.f32 %v3158_v37, %v4364_v62 }
 0x19a   : > { %v3223_v0 = vpop.f32.mrb[80].mxu1  ;;  %v3159_v1 = vpop.f32.mrb[80].mxu0 }
 0x19b   : > { %v3224_v10 = vpop.f32.mrb[81].mxu1  ;;  %v3160_v20 = vpop.f32.mrb[81].mxu0 }
 0x19c   : > { %v3225_v22 = vadd.f32 %v3224_v10, %v3223_v0  ;;  %v3226_v48 = vpop.f32.mrb[82].mxu1  ;;  %v3161_v53 = vadd.f32 %v3160_v20, %v3159_v1  ;;  %v3162_v13 = vpop.f32.mrb[82].mxu0 }
 0x19d   : > { %v3227_v47 = vpop.f32.mrb[83].mxu1  ;;  %v3163_v25 = vpop.f32.mrb[83].mxu0 }
 0x19e   : > { %v3228_v46 = vadd.f32 %v3227_v47, %v3226_v48  ;;  %v4458_v18 = vadd.f32 %v3225_v22, %v4369_v15  ;;  %v4462_v6 = vadd.f32 %v3161_v53, %v4366_v57  ;;  %v3164_v62 = vadd.f32 %v3163_v25, %v3162_v13 }
 0x1a0   : > { %v4470_v39 = vadd.f32 %v3228_v46, %v4374_v38  ;;  %v4474_v54 = vadd.f32 %v3164_v62, %v4371_v8 }
 0x1a2   : > { %v3229_v15 = vpop.f32.mrb[84].mxu1  ;;  %v3165_v42 = vpop.f32.mrb[84].mxu0 }
 0x1a3   : > { %v3230_v43 = vpop.f32.mrb[85].mxu1  ;;  %v3166_v57 = vpop.f32.mrb[85].mxu0 }
 0x1a4   : > { %v3231_v34 = vadd.f32 %v3230_v43, %v3229_v15  ;;  %v3232_v4 = vpop.f32.mrb[86].mxu1  ;;  %v3167_v2 = vadd.f32 %v3166_v57, %v3165_v42  ;;  %v3168_v12 = vpop.f32.mrb[86].mxu0 }
 0x1a5   : > { %v3233_v17 = vpop.f32.mrb[87].mxu1  ;;  %v3169_v44 = vpop.f32.mrb[87].mxu0 }
 0x1a6   : > { %v3234_v60 = vadd.f32 %v3233_v17, %v3232_v4  ;;  %v4477_v59 = vadd.f32 %v3231_v34, %v4379_v29  ;;  %v4480_v38 = vadd.f32 %v3167_v2, %v4376_v30  ;;  %v3170_v51 = vadd.f32 %v3169_v44, %v3168_v12 }
 0x1a8   : > { %v4483_v8 = vadd.f32 %v3234_v60, %v4384_v21  ;;  %v4486_v33 = vadd.f32 %v3170_v51, %v4381_v19 }
 0x1aa   : > { %v3235_v56 = vpop.f32.mrb[88].mxu1  ;;  %v3171_v36 = vpop.f32.mrb[88].mxu0 }
 0x1ab   : > { %v3236_v37 = vpop.f32.mrb[89].mxu1  ;;  %v3172_v0 = vpop.f32.mrb[89].mxu0 }
 0x1ac   : > { %v3237_v1 = vadd.f32 %v3236_v37, %v3235_v56  ;;  %v3238_v10 = vpop.f32.mrb[90].mxu1  ;;  %v3173_v20 = vadd.f32 %v3172_v0, %v3171_v36  ;;  %v3174_v22 = vpop.f32.mrb[90].mxu0 }
 0x1ad   : > { %v3239_v29 = vpop.f32.mrb[91].mxu1  ;;  %v3175_v48 = vpop.f32.mrb[91].mxu0 }
 0x1ae   : > { %v3240_v53 = vadd.f32 %v3239_v29, %v3238_v10  ;;  %v4489_v30 = vadd.f32 %v3237_v1, %v4390_v61  ;;  %v4492_v21 = vadd.f32 %v3173_v20, %v4387_v41  ;;  %v3176_v13 = vadd.f32 %v3175_v48, %v3174_v22 }
 0x1b0   : > { %v4495_v19 = vadd.f32 %v3240_v53, %v4395_v50  ;;  %v4498_v47 = vadd.f32 %v3176_v13, %v4392_v63 }
 0x1b2   : > { %v3241_v25 = vpop.f32.mrb[92].mxu1  ;;  %v3177_v46 = vpop.f32.mrb[92].mxu0 }
 0x1b3   : > { %v3242_v62 = vpop.f32.mrb[93].mxu1  ;;  %v3178_v28 = vpop.f32.mrb[93].mxu0 }
 0x1b4   : > { %v3243_v15 = vadd.f32 %v3242_v62, %v3241_v25  ;;  %v3244_v42 = vpop.f32.mrb[94].mxu1  ;;  %v3179_v43 = vadd.f32 %v3178_v28, %v3177_v46  ;;  %v3180_v57 = vpop.f32.mrb[94].mxu0 }
 0x1b5   : > { %v3245_v61 = vpop.f32.mrb[95].mxu1  ;;  %v3181_v34 = vpop.f32.mrb[95].mxu0 }
 0x1b6   : > { %v3246_v4 = vadd.f32 %v3245_v61, %v3244_v42  ;;  %v4501_v41 = vadd.f32 %v3243_v15, %v4401_v45  ;;  %v4504_v50 = vadd.f32 %v3179_v43, %v4398_v3  ;;  %v3182_v2 = vadd.f32 %v3181_v34, %v3180_v57 }
 0x1b8   : > { %v4507_v63 = vadd.f32 %v3246_v4, %v4407_v31  ;;  %v4510_v12 = vadd.f32 %v3182_v2, %v4404_v26 }
 0x1ba   : > { %v3247_v17 = vpop.f32.mrb[96].mxu1  ;;  %v3183_v44 = vpop.f32.mrb[96].mxu0 }
 0x1bb   : > { %v3248_v60 = vpop.f32.mrb[97].mxu1  ;;  %v3184_v51 = vpop.f32.mrb[97].mxu0 }
 0x1bc   : > { %v3249_v56 = vadd.f32 %v3248_v60, %v3247_v17  ;;  %v3250_v36 = vpop.f32.mrb[98].mxu1  ;;  %v3185_v37 = vadd.f32 %v3184_v51, %v3183_v44  ;;  %v3186_v0 = vpop.f32.mrb[98].mxu0 }
 0x1bd   : > { %v3251_v45 = vpop.f32.mrb[99].mxu1  ;;  %v3187_v1 = vpop.f32.mrb[99].mxu0 }
 0x1be   : > { %v3252_v10 = vadd.f32 %v3251_v45, %v3250_v36  ;;  %v4513_v3 = vadd.f32 %v3249_v56, %v4413_v24  ;;  %v4516_v31 = vadd.f32 %v3185_v37, %v4410_v9  ;;  %v3188_v20 = vadd.f32 %v3187_v1, %v3186_v0 }
 0x1c0   : > { %v4519_v26 = vadd.f32 %v3252_v10, %v4419_v35  ;;  %v4522_v22 = vadd.f32 %v3188_v20, %v4416_v52 }
 0x1c2   : > { %v3253_v29 = vpop.f32.mrb[100].mxu1  ;;  %v3189_v48 = vpop.f32.mrb[100].mxu0 }
 0x1c3   : > { %v3254_v53 = vpop.f32.mrb[101].mxu1  ;;  %v3190_v13 = vpop.f32.mrb[101].mxu0 }
 0x1c4   : > { %v3255_v25 = vadd.f32 %v3254_v53, %v3253_v29  ;;  %v3256_v46 = vpop.f32.mrb[102].mxu1  ;;  %v3191_v62 = vadd.f32 %v3190_v13, %v3189_v48  ;;  %v3192_v28 = vpop.f32.mrb[102].mxu0 }
 0x1c5   : > { %v3257_v24 = vpop.f32.mrb[103].mxu1  ;;  %v3193_v15 = vpop.f32.mrb[103].mxu0 }
 0x1c6   : > { %v3258_v42 = vadd.f32 %v3257_v24, %v3256_v46  ;;  %v4525_v9 = vadd.f32 %v3255_v25, %v4425_v16  ;;  %v4528_v35 = vadd.f32 %v3191_v62, %v4422_v58  ;;  %v3194_v43 = vadd.f32 %v3193_v15, %v3192_v28 }
 0x1c8   : > { %v4531_v52 = vadd.f32 %v3258_v42, %v4431_v49  ;;  %v4534_v57 = vadd.f32 %v3194_v43, %v4428_v5 }
 0x1ca   : > { %v3259_v61 = vpop.f32.mrb[104].mxu1  ;;  %v3195_v34 = vpop.f32.mrb[104].mxu0 }
 0x1cb   : > { %v3260_v4 = vpop.f32.mrb[105].mxu1  ;;  %v3196_v2 = vpop.f32.mrb[105].mxu0 }
 0x1cc   : > { %v3261_v17 = vadd.f32 %v3260_v4, %v3259_v61  ;;  %v3262_v44 = vpop.f32.mrb[106].mxu1  ;;  %v3197_v60 = vadd.f32 %v3196_v2, %v3195_v34  ;;  %v3198_v51 = vpop.f32.mrb[106].mxu0 }
 0x1cd   : > { %v3263_v16 = vpop.f32.mrb[107].mxu1  ;;  %v3199_v56 = vpop.f32.mrb[107].mxu0 }
 0x1ce   : > { %v3264_v36 = vadd.f32 %v3263_v16, %v3262_v44  ;;  %v4537_v58 = vadd.f32 %v3261_v17, %v4437_v14  ;;  %v4540_v49 = vadd.f32 %v3197_v60, %v4434_v55  ;;  %v3200_v37 = vadd.f32 %v3199_v56, %v3198_v51 }
 0x1d0   : > { %v4543_v5 = vadd.f32 %v3264_v36, %v4443_v11  ;;  %v4546_v0 = vadd.f32 %v3200_v37, %v4440_v7 }
 0x1d2   : > { %v3265_v45 = vpop.f32.mrb[108].mxu1  ;;  %v3201_v1 = vpop.f32.mrb[108].mxu0 }
 0x1d3   : > { %v3266_v10 = vpop.f32.mrb[109].mxu1  ;;  %v3202_v20 = vpop.f32.mrb[109].mxu0 }
 0x1d4   : > { %v3267_v29 = vadd.f32 %v3266_v10, %v3265_v45  ;;  %v3268_v48 = vpop.f32.mrb[110].mxu1  ;;  %v3203_v53 = vadd.f32 %v3202_v20, %v3201_v1  ;;  %v3204_v13 = vpop.f32.mrb[110].mxu0 }
 0x1d5   : > { %v3269_v14 = vpop.f32.mrb[111].mxu1  ;;  %v3205_v25 = vpop.f32.mrb[111].mxu0 }
 0x1d6   : > { %v3270_v55 = vadd.f32 %v3269_v14, %v3268_v48  ;;  %v4549_v46 = vadd.f32 %v3267_v29, %v4449_v32  ;;  %v4552_v11 = vadd.f32 %v3203_v53, %v4446_v27  ;;  %v3206_v7 = vadd.f32 %v3205_v25, %v3204_v13 }
 0x1d8   : > { %v4555_v62 = vadd.f32 %v3270_v55, %v4455_v23  ;;  %v4558_v28 = vadd.f32 %v3206_v7, %v4452_v40 }
 0x1da   : > { %v3271_v24 = vpop.f32.mrb[112].mxu1  ;;  %v3361_v15 = vpop.f32.mrb[112].mxu0 }
 0x1db   : > { %v3272_v42 = vpop.f32.mrb[113].mxu1  ;;  %v2039_v43 = vadd.f32 %v3361_v15, %v4477_v59  ;;  %v2030_v34 = vpop.f32.mrb[113].mxu0 }
 0x1dc   : > { %v3273_v61 = vadd.f32 %v3272_v42, %v3271_v24  ;;  %v3274_v4 = vpop.f32.mrb[114].mxu1  ;;  %v2031_v32 = vadd.f32 %v2030_v34, %v4458_v18  ;;  %v3362_v27 = vpop.f32.mrb[114].mxu0 }
 0x1dd   : > { %v3275_v2 = vpop.f32.mrb[115].mxu1  ;;  %v2042_v17 = vadd.f32 %v3362_v27, %v4483_v8  ;;  %v2033_v44 = vpop.f32.mrb[115].mxu0  ;;  %v2361_v36 = vmul.f32 %v2039_v43, %v2039_v43 }
 0x1de   : > { %v3276_v23 = vadd.f32 %v3275_v2, %v3274_v4  ;;  %v4565_v40 = vadd.f32 %v3273_v61, %v4462_v6  ;;  %v2034_v59 = vadd.f32 %v2033_v44, %v4470_v39  ;;  %v2359_v51 = vmul.f32 %v2031_v32, %v2031_v32 }
 0x1df   : > { %v2784_v60 = vpack.c.bf16 %v2042_v17, %v2039_v43  ;;  %v2362_v53 = vmul.f32 %v2042_v17, %v2042_v17 }
 0x1e0   : > { %v4574_v18 = vadd.f32 %v3276_v23, %v4474_v54  ;;  %v2779_v8 = vpack.c.bf16 %v2034_v59, %v2031_v32  ;;  %v2322_v16 = vadd.f32 %v2034_v59, %v2031_v32  ;;  %v2360_v56 = vmul.f32 %v2034_v59, %v2034_v59 }
 0x1e1   : > { %2856 = vst [vmem:[%s4570_s10 + $0x8] sm:$0xff] %v2784_v60  }
 0x1e2   : > { %v3277_v6 = vpop.f32.mrb[116].mxu1  ;;  %2780 = vst [vmem:[%s4570_s10] sm:$0xff] %v2779_v8   ;;  %v2323_v37 = vadd.f32 %v2322_v16, %v2039_v43  ;;  %v2391_v45 = vadd.f32 %v2360_v56, %v2359_v51  ;;  %v3365_v1 = vpop.f32.mrb[116].mxu0 }
 0x1e3   : > { %v3278_v10 = vpop.f32.mrb[117].mxu1  ;;  %v2055_v20 = vadd.f32 %v3365_v1, %v4501_v41  ;;  %v2046_v39 = vpop.f32.mrb[117].mxu0 }
 0x1e4   : > { %v3279_v29 = vadd.f32 %v3278_v10, %v3277_v6  ;;  %v3280_v48 = vpop.f32.mrb[118].mxu1  ;;  %v2392_v54 = vadd.f32 %v2391_v45, %v2361_v36  ;;  %v2047_v13 = vadd.f32 %v2046_v39, %v4489_v30  ;;  %v2324_v14 = vadd.f32 %v2323_v37, %v2042_v17  ;;  %v3366_v25 = vpop.f32.mrb[118].mxu0 }
 0x1e5   : > { %v3281_v55 = vpop.f32.mrb[119].mxu1  ;;  %v2058_v7 = vadd.f32 %v3366_v25, %v4507_v63  ;;  %v2049_v15 = vpop.f32.mrb[119].mxu0  ;;  %v2365_v23 = vmul.f32 %v2055_v20, %v2055_v20 }
 0x1e6   : > { %v3282_v24 = vadd.f32 %v3281_v55, %v3280_v48  ;;  %v4582_v42 = vadd.f32 %v3279_v29, %v4480_v38  ;;  %v2325_v41 = vadd.f32 %v2324_v14, %v2047_v13  ;;  %v2363_v43 = vmul.f32 %v2047_v13, %v2047_v13 }
 0x1e7   : > { %v2393_v61 = vadd.f32 %v2392_v54, %v2362_v53  ;;  %v2050_v34 = vadd.f32 %v2049_v15, %v4495_v19  ;;  %v2794_v4 = vpack.c.bf16 %v2058_v7, %v2055_v20  ;;  %v2366_v56 = vmul.f32 %v2058_v7, %v2058_v7 }
 0x1e8   : > { %v4586_v30 = vadd.f32 %v3282_v24, %v4486_v33 }
 0x1e9   : > { %v2394_v32 = vadd.f32 %v2393_v61, %v2363_v43  ;;  %v2789_v27 = vpack.c.bf16 %v2050_v34, %v2047_v13  ;;  %v2326_v2 = vadd.f32 %v2325_v41, %v2050_v34  ;;  %v2364_v17 = vmul.f32 %v2050_v34, %v2050_v34  ;;  %2858 = vst [vmem:[%s4570_s10 + $0x18] sm:$0xff] %v2794_v4  }
 0x1ea   : > { %v3283_v63 = vpop.f32.mrb[120].mxu1  ;;  %v3369_v59 = vpop.f32.mrb[120].mxu0 }
 0x1eb   : > { %2857 = vst [vmem:[%s4570_s10 + $0x10] sm:$0xff] %v2789_v27   ;;  %v2327_v44 = vadd.f32 %v2326_v2, %v2055_v20  ;;  %v2395_v38 = vadd.f32 %v2394_v32, %v2364_v17  ;;  %v3284_v60 = vpop.f32.mrb[121].mxu1  ;;  %v2071_v51 = vadd.f32 %v3369_v59, %v4525_v9  ;;  %v2062_v19 = vpop.f32.mrb[121].mxu0 }
 0x1ec   : > { %v3285_v8 = vadd.f32 %v3284_v60, %v3283_v63  ;;  %v3286_v16 = vpop.f32.mrb[122].mxu1  ;;  %v2063_v6 = vadd.f32 %v2062_v19, %v4513_v3  ;;  %v3370_v37 = vpop.f32.mrb[122].mxu0 }
 0x1ed   : > { %v2396_v33 = vadd.f32 %v2395_v38, %v2365_v23  ;;  %v2328_v36 = vadd.f32 %v2327_v44, %v2058_v7  ;;  %v3287_v45 = vpop.f32.mrb[123].mxu1  ;;  %v2074_v1 = vadd.f32 %v3370_v37, %v4531_v52  ;;  %v2065_v20 = vpop.f32.mrb[123].mxu0  ;;  %v2369_v7 = vmul.f32 %v2071_v51, %v2071_v51 }
 0x1ee   : > { %v3288_v10 = vadd.f32 %v3287_v45, %v3286_v16  ;;  %v4594_v29 = vadd.f32 %v3285_v8, %v4492_v21  ;;  %v2367_v39 = vmul.f32 %v2063_v6, %v2063_v6  ;;  %v2066_v53 = vadd.f32 %v2065_v20, %v4519_v26 }
 0x1ef   : > { %v2329_v9 = vadd.f32 %v2328_v36, %v2063_v6  ;;  %v2397_v48 = vadd.f32 %v2396_v33, %v2366_v56  ;;  %v2804_v54 = vpack.c.bf16 %v2074_v1, %v2071_v51  ;;  %v2370_v4 = vmul.f32 %v2074_v1, %v2074_v1 }
 0x1f0   : > { %v4598_v3 = vadd.f32 %v3288_v10, %v4498_v47  ;;  %v2799_v14 = vpack.c.bf16 %v2066_v53, %v2063_v6  ;;  %v2368_v55 = vmul.f32 %v2066_v53, %v2066_v53 }
 0x1f1   : > { %v2398_v13 = vadd.f32 %v2397_v48, %v2367_v39  ;;  %v2330_v25 = vadd.f32 %v2329_v9, %v2066_v53  ;;  %2860 = vst [vmem:[%s4570_s10 + $0x28] sm:$0xff] %v2804_v54  }
 0x1f2   : > { %v3289_v52 = vpop.f32.mrb[124].mxu1  ;;  %2859 = vst [vmem:[%s4570_s10 + $0x20] sm:$0xff] %v2799_v14   ;;  %v3373_v15 = vpop.f32.mrb[124].mxu0 }
 0x1f3   : > { %v2331_v24 = vadd.f32 %v2330_v25, %v2071_v51  ;;  %v2399_v21 = vadd.f32 %v2398_v13, %v2368_v55  ;;  %v3290_v41 = vpop.f32.mrb[125].mxu1  ;;  %v2087_v43 = vadd.f32 %v3373_v15, %v4549_v46  ;;  %v2078_v26 = vpop.f32.mrb[125].mxu0 }
 0x1f4   : > { %v3291_v61 = vadd.f32 %v3290_v41, %v3289_v52  ;;  %v3292_v34 = vpop.f32.mrb[126].mxu1  ;;  %v2079_v32 = vadd.f32 %v2078_v26, %v4537_v58  ;;  %v3374_v2 = vpop.f32.mrb[126].mxu0 }
 0x1f5   : > { %v2400_v47 = vadd.f32 %v2399_v21, %v2369_v7  ;;  %v2332_v27 = vadd.f32 %v2331_v24, %v2074_v1  ;;  %v3293_v17 = vpop.f32.mrb[127].mxu1  ;;  %v2090_v63 = vadd.f32 %v3374_v2, %v4555_v62  ;;  %v2081_v44 = vpop.f32.mrb[127].mxu0  ;;  %v2373_v62 = vmul.f32 %v2087_v43, %v2087_v43 }
 0x1f6   : > { %v3294_v23 = vadd.f32 %v3293_v17, %v3292_v34  ;;  %v1958_v38 = vadd.f32 %v3291_v61, %v4504_v50  ;;  %v2371_v46 = vmul.f32 %v2079_v32, %v2079_v32  ;;  %v2082_v51 = vadd.f32 %v2081_v44, %v4543_v5 }
 0x1f7   : > { %v2333_v59 = vadd.f32 %v2332_v27, %v2079_v32  ;;  %v2401_v60 = vadd.f32 %v2400_v47, %v2370_v4  ;;  %v2814_v8 = vpack.c.bf16 %v2090_v63, %v2087_v43  ;;  %v2374_v9 = vmul.f32 %v2090_v63, %v2090_v63 }
 0x1f8   : > { %v1961_v19 = vadd.f32 %v3294_v23, %v4510_v12  ;;  %v2809_v16 = vpack.c.bf16 %v2082_v51, %v2079_v32  ;;  %v2372_v33 = vmul.f32 %v2082_v51, %v2082_v51 }
 0x1f9   : > { %v2402_v58 = vadd.f32 %v2401_v60, %v2371_v46  ;;  %v2334_v56 = vadd.f32 %v2333_v59, %v2082_v51  ;;  %2862 = vst [vmem:[%s4570_s10 + $0x38] sm:$0xff] %v2814_v8  }
 0x1fa   : > { %v3295_v6 = vpop.f32.mrb[128].mxu1  ;;  %2861 = vst [vmem:[%s4570_s10 + $0x30] sm:$0xff] %v2809_v16   ;;  %v3377_v45 = vpop.f32.mrb[128].mxu0 }
 0x1fb   : > { %v2335_v36 = vadd.f32 %v2334_v56, %v2087_v43  ;;  %v2403_v37 = vadd.f32 %v2402_v58, %v2372_v33  ;;  %v3296_v50 = vpop.f32.mrb[129].mxu1  ;;  %v2103_v1 = vadd.f32 %v3377_v45, %v4582_v42  ;;  %v2094_v20 = vpop.f32.mrb[129].mxu0 }
 0x1fc   : > { %v3297_v10 = vadd.f32 %v3296_v50, %v3295_v6  ;;  %v3298_v5 = vpop.f32.mrb[130].mxu1  ;;  %v2095_v12 = vadd.f32 %v2094_v20, %v4565_v40  ;;  %v3378_v53 = vpop.f32.mrb[130].mxu0 }
 0x1fd   : > { %v2404_v39 = vadd.f32 %v2403_v37, %v2373_v62  ;;  %v2336_v48 = vadd.f32 %v2335_v36, %v2090_v63  ;;  %v3299_v54 = vpop.f32.mrb[131].mxu1  ;;  %v2106_v13 = vadd.f32 %v3378_v53, %v4586_v30  ;;  %v2097_v25 = vpop.f32.mrb[131].mxu0  ;;  %v2377_v30 = vmul.f32 %v2103_v1, %v2103_v1 }
 0x1fe   : > { %v3300_v14 = vadd.f32 %v3299_v54, %v3298_v5  ;;  %v1966_v55 = vadd.f32 %v3297_v10, %v4516_v31  ;;  %v2375_v42 = vmul.f32 %v2095_v12, %v2095_v12  ;;  %v2098_v24 = vadd.f32 %v2097_v25, %v4574_v18 }
 0x1ff   : > { %v2337_v52 = vadd.f32 %v2336_v48, %v2095_v12  ;;  %v2405_v7 = vadd.f32 %v2404_v39, %v2374_v9  ;;  %v2824_v21 = vpack.c.bf16 %v2106_v13, %v2103_v1  ;;  %v2378_v18 = vmul.f32 %v2106_v13, %v2106_v13 }
 0x200   : > { %v1969_v15 = vadd.f32 %v3300_v14, %v4522_v22  ;;  %v2819_v41 = vpack.c.bf16 %v2098_v24, %v2095_v12  ;;  %v2376_v61 = vmul.f32 %v2098_v24, %v2098_v24 }
 0x201   : > { %v2406_v40 = vadd.f32 %v2405_v7, %v2375_v42  ;;  %v2338_v43 = vadd.f32 %v2337_v52, %v2098_v24  ;;  %2864 = vst [vmem:[%s4570_s10 + $0x48] sm:$0xff] %v2824_v21  }
 0x202   : > { %v3301_v26 = vpop.f32.mrb[132].mxu1  ;;  %2863 = vst [vmem:[%s4570_s10 + $0x40] sm:$0xff] %v2819_v41   ;;  %v3381_v47 = vpop.f32.mrb[132].mxu0 }
 0x203   : > { %v2339_v34 = vadd.f32 %v2338_v43, %v2103_v1  ;;  %v2407_v4 = vadd.f32 %v2406_v40, %v2376_v61  ;;  %v3302_v31 = vpop.f32.mrb[133].mxu1  ;;  %v2119_v32 = vadd.f32 %v3381_v47, %v1958_v38  ;;  %v2110_v2 = vpop.f32.mrb[133].mxu0 }
 0x204   : > { %v3303_v27 = vadd.f32 %v3302_v31, %v3301_v26  ;;  %v3304_v17 = vpop.f32.mrb[134].mxu1  ;;  %v2111_v22 = vadd.f32 %v2110_v2, %v4594_v29  ;;  %v3382_v44 = vpop.f32.mrb[134].mxu0 }
 0x205   : > { %v2408_v63 = vadd.f32 %v2407_v4, %v2377_v30  ;;  %v2340_v23 = vadd.f32 %v2339_v34, %v2106_v13  ;;  %v3305_v59 = vpop.f32.mrb[135].mxu1  ;;  %v2122_v46 = vadd.f32 %v3382_v44, %v1961_v19  ;;  %v2113_v51 = vpop.f32.mrb[135].mxu0  ;;  %v2381_v19 = vmul.f32 %v2119_v32, %v2119_v32 }
 0x206   : > { %v3306_v60 = vadd.f32 %v3305_v59, %v3304_v17  ;;  %v1974_v8 = vadd.f32 %v3303_v27, %v4528_v35  ;;  %v2379_v16 = vmul.f32 %v2111_v22, %v2111_v22  ;;  %v2114_v56 = vadd.f32 %v2113_v51, %v4598_v3 }
 0x207   : > { %v2341_v58 = vadd.f32 %v2340_v23, %v2111_v22  ;;  %v2409_v38 = vadd.f32 %v2408_v63, %v2378_v18  ;;  %v2834_v33 = vpack.c.bf16 %v2122_v46, %v2119_v32  ;;  %v2382_v3 = vmul.f32 %v2122_v46, %v2122_v46 }
 0x208   : > { %v1977_v6 = vadd.f32 %v3306_v60, %v4534_v57  ;;  %v2829_v29 = vpack.c.bf16 %v2114_v56, %v2111_v22  ;;  %v2380_v37 = vmul.f32 %v2114_v56, %v2114_v56 }
 0x209   : > { %v2410_v62 = vadd.f32 %v2409_v38, %v2379_v16  ;;  %v2342_v36 = vadd.f32 %v2341_v58, %v2114_v56  ;;  %2866 = vst [vmem:[%s4570_s10 + $0x58] sm:$0xff] %v2834_v33  }
 0x20a   : > { %v3307_v45 = vpop.f32.mrb[136].mxu1  ;;  %2865 = vst [vmem:[%s4570_s10 + $0x50] sm:$0xff] %v2829_v29   ;;  %v3385_v10 = vpop.f32.mrb[136].mxu0 }
 0x20b   : > { %v2343_v50 = vadd.f32 %v2342_v36, %v2119_v32  ;;  %v2411_v1 = vadd.f32 %v2410_v62, %v2380_v37  ;;  %v3308_v35 = vpop.f32.mrb[137].mxu1  ;;  %v2135_v20 = vadd.f32 %v3385_v10, %v1974_v8  ;;  %v2126_v9 = vpop.f32.mrb[137].mxu0 }
 0x20c   : > { %v3309_v5 = vadd.f32 %v3308_v35, %v3307_v45  ;;  %v3310_v39 = vpop.f32.mrb[138].mxu1  ;;  %v2127_v48 = vadd.f32 %v2126_v9, %v1966_v55  ;;  %v3386_v53 = vpop.f32.mrb[138].mxu0 }
 0x20d   : > { %v2412_v12 = vadd.f32 %v2411_v1, %v2381_v19  ;;  %v2344_v57 = vadd.f32 %v2343_v50, %v2122_v46  ;;  %v3311_v54 = vpop.f32.mrb[139].mxu1  ;;  %v2138_v13 = vadd.f32 %v3386_v53, %v1977_v6  ;;  %v2129_v25 = vpop.f32.mrb[139].mxu0  ;;  %v2385_v34 = vmul.f32 %v2135_v20, %v2135_v20 }
 0x20e   : > { %v3312_v14 = vadd.f32 %v3311_v54, %v3310_v39  ;;  %v1982_v52 = vadd.f32 %v3309_v5, %v4540_v49  ;;  %v2383_v7 = vmul.f32 %v2127_v48, %v2127_v48  ;;  %v2130_v21 = vadd.f32 %v2129_v25, %v1969_v15  ;;  %v2428_v54 = vld [vmem:[%s4467_s6] sm:$0x3] }
 0x20f   : > { %v2345_v42 = vadd.f32 %v2344_v57, %v2127_v48  ;;  %v2413_v24 = vadd.f32 %v2412_v12, %v2382_v3  ;;  %v2844_v40 = vpack.c.bf16 %v2138_v13, %v2135_v20  ;;  %v2386_v17 = vmul.f32 %v2138_v13, %v2138_v13 }
 0x210   : > { %v1985_v41 = vadd.f32 %v3312_v14, %v4546_v0  ;;  %v2839_v61 = vpack.c.bf16 %v2130_v21, %v2127_v48  ;;  %v2384_v26 = vmul.f32 %v2130_v21, %v2130_v21 }
 0x211   : > { %v2414_v43 = vadd.f32 %v2413_v24, %v2383_v7  ;;  %v2346_v55 = vadd.f32 %v2345_v42, %v2130_v21  ;;  %2868 = vst [vmem:[%s4570_s10 + $0x68] sm:$0xff] %v2844_v40  }
 0x212   : > { %v3313_v30 = vpop.f32.mrb[140].mxu1  ;;  %2867 = vst [vmem:[%s4570_s10 + $0x60] sm:$0xff] %v2839_v61   ;;  %v3389_v31 = vpop.f32.mrb[140].mxu0 }
 0x213   : > { %v2347_v4 = vadd.f32 %v2346_v55, %v2135_v20  ;;  %v2415_v47 = vadd.f32 %v2414_v43, %v2384_v26  ;;  %v3314_v32 = vpop.f32.mrb[141].mxu1  ;;  %v2142_v27 = vpop.f32.mrb[141].mxu0 }
 0x214   : > { %v3315_v49 = vadd.f32 %v3314_v32, %v3313_v30  ;;  %v3316_v2 = vpop.f32.mrb[142].mxu1  ;;  %v2143_v18 = vadd.f32 %v2142_v27, %v1982_v52  ;;  %v3390_v0 = vpop.f32.mrb[142].mxu0 }
 0x215   : > { %v2416_v15 = vadd.f32 %v2415_v47, %v2385_v34  ;;  %v2348_v63 = vadd.f32 %v2347_v4, %v2138_v13  ;;  %v3317_v22 = vpop.f32.mrb[143].mxu1  ;;  %v2145_v59 = vpop.f32.mrb[143].mxu0 }
 0x216   : > { %v1990_v23 = vadd.f32 %v3315_v49, %v4552_v11  ;;  %v3318_v44 = vadd.f32 %v3317_v22, %v3316_v2  ;;  %v2387_v60 = vmul.f32 %v2143_v18, %v2143_v18  ;;  %v2146_v8 = vadd.f32 %v2145_v59, %v1985_v41 }
 0x217   : > { %v2349_v46 = vadd.f32 %v2348_v63, %v2143_v18  ;;  %v2417_v51 = vadd.f32 %v2416_v15, %v2386_v17 }
 0x218   : > { %v2151_v58 = vadd.f32 %v3389_v31, %v1990_v23  ;;  %v1993_v16 = vadd.f32 %v3318_v44, %v4558_v28  ;;  %v2849_v56 = vpack.c.bf16 %v2146_v8, %v2143_v18  ;;  %v2388_v6 = vmul.f32 %v2146_v8, %v2146_v8 }
 0x219   : > { %v2418_v38 = vadd.f32 %v2417_v51, %v2387_v60  ;;  %v2350_v33 = vadd.f32 %v2349_v46, %v2146_v8 }
 0x21a   : > { %v2389_v62 = vmul.f32 %v2151_v58, %v2151_v58  ;;  %v2154_v29 = vadd.f32 %v3390_v0, %v1993_v16  ;;  %2869 = vst [vmem:[%s4570_s10 + $0x70] sm:$0xff] %v2849_v56  }
 0x21b   : > { %v2351_v36 = vadd.f32 %v2350_v33, %v2151_v58  ;;  %v2419_v37 = vadd.f32 %v2418_v38, %v2388_v6 }
 0x21c   : > { %v2854_v11 = vpack.c.bf16 %v2154_v29, %v2151_v58  ;;  %v2390_v45 = vmul.f32 %v2154_v29, %v2154_v29 }
 0x21d   : > { %v2352_v19 = vadd.f32 %v2351_v36, %v2154_v29  ;;  %v2420_v50 = vadd.f32 %v2419_v37, %v2389_v62 }
 0x21e   : > { %2870 = vst [vmem:[%s4570_s10 + $0x78] sm:$0xff] %v2854_v11  }
 0x21f   : > { %v2353_v1 = vrot.slane %v2352_v19, 4  ;;  %v2421_v10 = vadd.f32 %v2420_v50, %v2390_v45 }
 0x221   : > { %v2354_v35 = vadd.f32 %v2353_v1, %v2352_v19  ;;  %v2422_v28 = vrot.slane %v2421_v10, 4 }
 0x223   : > { %v2355_v20 = vrot.slane %v2354_v35, 2  ;;  %v2423_v5 = vadd.f32 %v2422_v28, %v2421_v10 }
 0x225   : > { %v2356_v9 = vadd.f32 %v2355_v20, %v2354_v35  ;;  %v2424_v39 = vrot.slane %v2423_v5, 2 }
 0x227   : > { %v2357_v3 = vrot.slane %v2356_v9, 1  ;;  %v2425_v12 = vadd.f32 %v2424_v39, %v2423_v5 }
 0x229   : > { %v2426_v48 = vrot.slane %v2425_v12, 1  ;;  %v2358_v57 = vadd.f32 %v2357_v3, %v2356_v9 }
 0x22b   : > { %v2427_v53 = vadd.f32 %v2426_v48, %v2425_v12 }
 0x22d   : > { %v2430_v13 = vsel %vm2429_vm2, %v2358_v57, %v2427_v53 }
 0x22e   : > { %v2431_v14 = vadd.f32 %v2430_v13, %v2428_v54 }
 0x230   : > { %2432 = vst [vmem:[%s4467_s6] sm:$0x3] %v2431_v14 }
 0x231 PF: > { %s14_s14 = sadd.s32 1, %s3568_s14   ;;  %s4647_s12 = smov %s3564_s13 }
 0x232   : > { %p11_p5 = scmp.ge.s32.totalorder %s14_s14, 4   ;;  %s4648_s13 = smov %s4650_s15 }
 0x234   :  { %13 = sbr.rel (!%p11_p5) target bundleno = 2 (0x2), region = 78 }

</bundles_post_ra>
